<compile_context>
chip_gen: v5e
topology: v5e:2x2
jax: 0.10.0
libtpu: 0.0.40
codegen_flags: <defaults>
</compile_context>

<pallas_src>
import functools
import math

import jax
import jax.numpy as jnp
from jax.experimental import pallas as pl
from jax.experimental.pallas import tpu as pltpu


def _patch_merge_kernel(x_ref, g_ref, b_ref, w_ref, o_ref, *, eps, inv_d):
    # x_ref: (th, 2, W2, 2C) tile.  Axis 1 is dh (even/odd input row); the
    # lane axis (2C) already carries the (dw, c) pair.
    th, _, w2, c2 = x_ref.shape
    rows = th * w2

    xe = x_ref[:, 0, :, :].reshape(rows, c2)   # row r=(i,j): [x(2i,2j,:),   x(2i,2j+1,:)]
    xo = x_ref[:, 1, :, :].reshape(rows, c2)   #              [x(2i+1,2j,:), x(2i+1,2j+1,:)]
    m = jnp.concatenate([xe, xo], axis=-1)     # (rows, 4C), channel order (dh, dw, c)

    # LayerNorm over the 4C merged channels (statistics are order-invariant).
    mean = jnp.sum(m, axis=-1, keepdims=True) * inv_d
    xc = m - mean
    var = jnp.sum(xc * xc, axis=-1, keepdims=True) * inv_d
    y = xc * jax.lax.rsqrt(var + eps) * g_ref[...] + b_ref[...]

    # Linear(4C -> 2C, bias=False).  Weight columns were pre-permuted to the
    # kernel's channel order, so this is a plain lane-dense MXU matmul.
    o_ref[...] = jnp.dot(
        y, w_ref[...],
        preferred_element_type=jnp.float32,
        precision=jax.lax.Precision.HIGHEST,
    ).astype(o_ref.dtype)


def _pick_row_tile(bh2, w2, target_rows):
    """Pick th | bh2 so that th*w2 rows per step is a multiple of 8 (or covers
    everything), stays <= target_rows, and leaves >= 2 grid steps when possible."""
    cands = [t for t in range(1, bh2 + 1)
             if bh2 % t == 0 and ((t * w2) % 8 == 0 or t == bh2)]
    pref = [t for t in cands if t * w2 <= target_rows and bh2 // t >= 2]
    if not pref:
        pref = [t for t in cands if t * w2 <= target_rows]
    return max(pref) if pref else min(cands)


def patch_merging_2d(x, gamma, beta, weight, *, eps=1e-5, target_rows=1024):
    """PatchMerging2D forward.

    x:      (B, H, W, C) float32
    gamma:  (4C,)  LayerNorm weight
    beta:   (4C,)  LayerNorm bias
    weight: (2C, 4C)  nn.Linear weight (PyTorch (out, in) layout), bias-free
    returns (B, H//2, W//2, 2C) float32
    """
    B, H, W, C = x.shape
    H2, W2 = H // 2, W // 2
    if H % 2 or W % 2:
        # PyTorch module truncates odd spatial dims (after a warning print).
        # TODO(synk): the runtime warning print itself has no kernel equivalent.
        x = x[:, : 2 * H2, : 2 * W2, :]
    C4, C2 = 4 * C, 2 * C
    BH2 = B * H2
    N = BH2 * W2

    # Pure-view reshape: axis layout (b*h2, dh, w2, dw*c).  No data movement.
    xv = x.reshape(BH2, 2, W2, C2)

    # Kernel channel order is (dh, dw, c); PyTorch cat([x0,x1,x2,x3]) order is
    # (dw, dh, c).  Permute the small parameters instead of the activations.
    p = jnp.arange(C4)
    dh, rem = p // C2, p % C2
    dw, c = rem // C, rem % C
    perm = dw * C2 + dh * C + c                        # kernel position -> canonical channel
    gamma_k = gamma[perm].reshape(1, C4).astype(jnp.float32)
    beta_k = beta[perm].reshape(1, C4).astype(jnp.float32)
    w_k = jnp.transpose(weight[:, perm]).astype(jnp.float32)   # (4C, 2C)

    th = _pick_row_tile(BH2, W2, target_rows)
    rows = th * W2
    grid = (BH2 // th,)

    kernel = functools.partial(_patch_merge_kernel, eps=float(eps), inv_d=1.0 / C4)

    out2 = pl.pallas_call(
        kernel,
        out_shape=jax.ShapeDtypeStruct((N, C2), jnp.float32),
        grid_spec=pltpu.PrefetchScalarGridSpec(
            num_scalar_prefetch=0,
            grid=grid,
            in_specs=[
                pl.BlockSpec((th, 2, W2, C2), lambda g: (g, 0, 0, 0)),  # x tile (contiguous)
                pl.BlockSpec((1, C4), lambda g: (0, 0)),                # gamma
                pl.BlockSpec((1, C4), lambda g: (0, 0)),                # beta
                pl.BlockSpec((C4, C2), lambda g: (0, 0)),               # weight (4C, 2C)
            ],
            out_specs=pl.BlockSpec((rows, C2), lambda g: (g, 0)),
        ),
        compiler_params=pltpu.CompilerParams(
            dimension_semantics=("parallel",),
        ),
    )(xv, gamma_k, beta_k, w_k)

    return out2.reshape(B, H2, W2, C2)


def _reference(x, gamma, beta, weight, eps=1e-5):
    """Pure-JAX reference mirroring the PyTorch forward exactly."""
    x0 = x[:, 0::2, 0::2, :]
    x1 = x[:, 1::2, 0::2, :]
    x2 = x[:, 0::2, 1::2, :]
    x3 = x[:, 1::2, 1::2, :]
    xc = jnp.concatenate([x0, x1, x2, x3], axis=-1)           # (B, H/2, W/2, 4C)
    mean = jnp.mean(xc, axis=-1, keepdims=True)
    var = jnp.mean((xc - mean) ** 2, axis=-1, keepdims=True)
    xn = (xc - mean) / jnp.sqrt(var + eps) * gamma + beta
    return jnp.einsum("bhwc,oc->bhwo", xn, weight, precision="highest")


if __name__ == "__main__":
    # Small shapes consistent with the module: dim=64 -> 4*dim=256, 2*dim=128.
    B, H, W, dim = 2, 16, 16, 64

    key = jax.random.PRNGKey(0)
    kx, kg, kb, kw = jax.random.split(key, 4)

    x = jax.random.normal(kx, (B, H, W, dim), dtype=jnp.float32)
    # LayerNorm affine params (randomized slightly so channel order is tested).
    gamma = 1.0 + 0.1 * jax.random.normal(kg, (4 * dim,), dtype=jnp.float32)
    beta = 0.1 * jax.random.normal(kb, (4 * dim,), dtype=jnp.float32)
    # nn.Linear(4*dim, 2*dim, bias=False) weight, PyTorch (out, in) layout.
    bound = 1.0 / math.sqrt(4 * dim)
    weight = jax.random.uniform(kw, (2 * dim, 4 * dim), jnp.float32, -bound, bound)

    out = patch_merging_2d(x, gamma, beta, weight)
    out = jax.block_until_ready(out)

    ref = _reference(x, gamma, beta, weight)
    assert out.shape == (B, H // 2, W // 2, 2 * dim), out.shape
    err = float(jnp.max(jnp.abs(out - ref)))
    assert err < 2e-3, f"Pallas output mismatch, max abs err = {err}"

    print("KERNEL_OK")
</pallas_src>

<mosaic_0001>
module attributes {stable_mosaic.version = 11 : i64} {
  func.func @_patch_merge_kernel(%arg0: i32, %arg1: memref<8x2x8x128xf32, #tpu.memory_space<vmem>>, %arg2: memref<1x256xf32, #tpu.memory_space<vmem>>, %arg3: memref<1x256xf32, #tpu.memory_space<vmem>>, %arg4: memref<256x128xf32, #tpu.memory_space<vmem>>, %arg5: memref<64x128xf32, #tpu.memory_space<vmem>>) attributes {dimension_semantics = [#tpu.dimension_semantics<parallel>], iteration_bounds = array<i64: 2>, scalar_prefetch = 0 : i64, scratch_operands = 0 : i64, tpu.core_type = #tpu.core_type<tc>, window_params = [{transform_indices = @transform_0, window_bounds = array<i64: 8, 2, 8, 128>}, {pipeline_mode = #tpu.pipeline_mode<synchronous>, transform_indices = @transform_1, window_bounds = array<i64: 1, 256>}, {pipeline_mode = #tpu.pipeline_mode<synchronous>, transform_indices = @transform_2, window_bounds = array<i64: 1, 256>}, {pipeline_mode = #tpu.pipeline_mode<synchronous>, transform_indices = @transform_3, window_bounds = array<i64: 256, 128>}, {transform_indices = @transform_4, window_bounds = array<i64: 64, 128>}]} {
    %c0 = arith.constant 0 : index
    %c0_0 = arith.constant 0 : index
    %c0_1 = arith.constant 0 : index
    %c0_2 = arith.constant 0 : index
    %0 = vector.load %arg1[%c0, %c0_0, %c0_1, %c0_2] : memref<8x2x8x128xf32, #tpu.memory_space<vmem>>, vector<8x1x8x128xf32>
    %1 = vector.shape_cast %0 : vector<8x1x8x128xf32> to vector<8x8x128xf32>
    %2 = vector.shape_cast %1 : vector<8x8x128xf32> to vector<64x128xf32>
    %c0_3 = arith.constant 0 : index
    %c1 = arith.constant 1 : index
    %c0_4 = arith.constant 0 : index
    %c0_5 = arith.constant 0 : index
    %3 = vector.load %arg1[%c0_3, %c1, %c0_4, %c0_5] : memref<8x2x8x128xf32, #tpu.memory_space<vmem>>, vector<8x1x8x128xf32>
    %4 = vector.shape_cast %3 : vector<8x1x8x128xf32> to vector<8x8x128xf32>
    %5 = vector.shape_cast %4 : vector<8x8x128xf32> to vector<64x128xf32>
    %6 = tpu.concatenate %2, %5 in 1 : vector<64x128xf32>, vector<64x128xf32> -> vector<64x256xf32>
    %cst = arith.constant dense<0.000000e+00> : vector<64xf32>
    %7 = vector.multi_reduction <add>, %6, %cst [1] : vector<64x256xf32> to vector<64xf32>
    %8 = vector.shape_cast %7 : vector<64xf32> to vector<64x1xf32>
    %cst_6 = arith.constant 3.906250e-03 : f32
    %9 = vector.broadcast %cst_6 : f32 to vector<64x1xf32>
    %10 = arith.mulf %8, %9 : vector<64x1xf32>
    %11 = vector.broadcast %10 : vector<64x1xf32> to vector<64x256xf32>
    %12 = arith.subf %6, %11 : vector<64x256xf32>
    %13 = arith.mulf %12, %12 : vector<64x256xf32>
    %cst_7 = arith.constant dense<0.000000e+00> : vector<64xf32>
    %14 = vector.multi_reduction <add>, %13, %cst_7 [1] : vector<64x256xf32> to vector<64xf32>
    %15 = vector.shape_cast %14 : vector<64xf32> to vector<64x1xf32>
    %cst_8 = arith.constant 3.906250e-03 : f32
    %16 = vector.broadcast %cst_8 : f32 to vector<64x1xf32>
    %17 = arith.mulf %15, %16 : vector<64x1xf32>
    %cst_9 = arith.constant 9.99999974E-6 : f32
    %18 = vector.broadcast %cst_9 : f32 to vector<64x1xf32>
    %19 = arith.addf %17, %18 : vector<64x1xf32>
    %20 = math.rsqrt %19 : vector<64x1xf32>
    %21 = vector.broadcast %20 : vector<64x1xf32> to vector<64x256xf32>
    %22 = arith.mulf %12, %21 : vector<64x256xf32>
    %c0_10 = arith.constant 0 : index
    %c0_11 = arith.constant 0 : index
    %23 = vector.load %arg2[%c0_10, %c0_11] : memref<1x256xf32, #tpu.memory_space<vmem>>, vector<1x256xf32>
    %24 = vector.broadcast %23 : vector<1x256xf32> to vector<64x256xf32>
    %25 = arith.mulf %22, %24 : vector<64x256xf32>
    %c0_12 = arith.constant 0 : index
    %c0_13 = arith.constant 0 : index
    %26 = vector.load %arg3[%c0_12, %c0_13] : memref<1x256xf32, #tpu.memory_space<vmem>>, vector<1x256xf32>
    %27 = vector.broadcast %26 : vector<1x256xf32> to vector<64x256xf32>
    %28 = arith.addf %25, %27 : vector<64x256xf32>
    %c0_14 = arith.constant 0 : index
    %c0_15 = arith.constant 0 : index
    %29 = vector.load %arg4[%c0_14, %c0_15] : memref<256x128xf32, #tpu.memory_space<vmem>>, vector<256x128xf32>
    %cst_16 = arith.constant dense<0.000000e+00> : vector<64x128xf32>
    %30 = tpu.matmul %28, %29, %cst_16 {dimension_numbers = #tpu.dot_dimension_numbers<[1], [0], [0], [1], [0, 0, 1, 1], [], []>, precision = #tpu.contract_precision<fp32>} : vector<64x256xf32>, vector<256x128xf32>, vector<64x128xf32> -> vector<64x128xf32>
    %c0_17 = arith.constant 0 : index
    %c0_18 = arith.constant 0 : index
    %31 = vector.load %arg5[%c0_17, %c0_18] : memref<64x128xf32, #tpu.memory_space<vmem>>, vector<64x128xf32>
    tpu.vector_store %arg5[%c0_17, %c0_18], %30 {strides = array<i32>} : memref<64x128xf32, #tpu.memory_space<vmem>>, vector<64x128xf32>,
    return
  }
  func.func @transform_0(%arg0: i32) -> (i32, i32, i32, i32) {
    %c0_i32 = arith.constant 0 : i32
    %c0_i32_0 = arith.constant 0 : i32
    %c0_i32_1 = arith.constant 0 : i32
    %c0_i32_2 = arith.constant 0 : i32
    return %arg0, %c0_i32, %c0_i32_0, %c0_i32_1 : i32, i32, i32, i32
  }
  func.func @transform_1(%arg0: i32) -> (i32, i32) {
    %c0_i32 = arith.constant 0 : i32
    %c0_i32_0 = arith.constant 0 : i32
    %c0_i32_1 = arith.constant 0 : i32
    return %c0_i32, %c0_i32_0 : i32, i32
  }
  func.func @transform_2(%arg0: i32) -> (i32, i32) {
    %c0_i32 = arith.constant 0 : i32
    %c0_i32_0 = arith.constant 0 : i32
    %c0_i32_1 = arith.constant 0 : i32
    return %c0_i32, %c0_i32_0 : i32, i32
  }
  func.func @transform_3(%arg0: i32) -> (i32, i32) {
    %c0_i32 = arith.constant 0 : i32
    %c0_i32_0 = arith.constant 0 : i32
    %c0_i32_1 = arith.constant 0 : i32
    return %c0_i32, %c0_i32_0 : i32, i32
  }
  func.func @transform_4(%arg0: i32) -> (i32, i32) {
    %c0_i32 = arith.constant 0 : i32
    %c0_i32_0 = arith.constant 0 : i32
    return %arg0, %c0_i32 : i32, i32
  }
}

</mosaic_0001>

<bundles_post_ra>
// kernel: tpu_custom_call.1
= control target key start
LH: loop header
LB: loop body
LE: loop exit
PB: predicated region body
PF: predicated region fallthrough
CT: control target
= control target key end

     0   :  { %9 = vsyncpa [#allocation3], 0  ;;  %s3370_s0 = inlined_call_operand.hbm [shape: f32[16,2,8,128], index: 0, kind: input, shape index: {}]   ;;  %s3371_s1 = inlined_call_operand.hbm [shape: f32[1,256], index: 1, kind: input, shape index: {}]   ;;  %s3372_s2 = inlined_call_operand.hbm [shape: f32[1,256], index: 2, kind: input, shape index: {}]   ;;  %s3373_s3 = inlined_call_operand.hbm [shape: f32[256,128], index: 3, kind: input, shape index: {}]   ;;  %s3374_s4 = inlined_call_operand.hbm [shape: f32[128,128], index: 4, kind: output, shape index: {}]  }
   0x1   :  { %11 = vsyncpa [#allocation3 + $0x1], 0 }
   0x2   :  { %12 = vsyncpa [#allocation6], 0 }
   0x3   :  { %13 = vsyncpa [#allocation9], 0 }
   0x4   :  { %14 = vsyncpa [#allocation4], 0 }
   0x5   :  { %16 = vsyncpa [#allocation4 + $0x1], 0  ;;  %s2159_s15 = smov 0   ;;  %s2161_s16 = smov 0  }
   0x6   :  { %s2163_s17 = smov 0   ;;  %s2165_s18 = smov 0  }
   0x7 LB: > { %s2180_s19 = sadd.s32 4294967295, %s2125_s18   ;;  %s1802_s20 = sadd.s32 4294967294, %s2125_s18   ;;  %s2125_s18 = sphi %s2165_s18, %s3471_s18   ;;  %s2121_s17 = sphi %s2163_s17, %s3470_s17   ;;  %s2117_s16 = sphi %s2161_s16, %s3469_s16   ;;  %s2113_s15 = sphi %s2159_s15, %s3468_s15  }
   0x8   : > { %p42_p0 = scmp.ne.s32.totalorder %s2117_s16, %s2113_s15  ;;  %p43_p1 = scmp.eq.s32.totalorder %s2180_s19, 0 }
   0x9   : > { %p129_p2 = scmp.eq.s32.totalorder %s2180_s19, 1  ;;  %p135_p3 = scmp.eq.s32.totalorder %s1802_s20, 1 }
   0xa   : > { %p2189_p4 = por %p43_p1, %p42_p0  ;;  %p1803_p5 = scmp.ge.s32.totalorder %s2125_s18, 1 }
   0xb   : > { %p2194_p6 = por %p135_p3, %p42_p0  ;;  %p142_p7 = scmp.lt.s32.totalorder %s2125_s18, 3 }
   0xc   : > { %s154_s25 = sshll.u32 %s3371_s1, 4  ;;  %s2127_s27 = smov [#allocation5]   ;;  %s155_s25 = int_to_ptr.hbm [resolvable:$true] %s154_s25 }
   0xd   : > { %p2202_p8 = pnand %p1803_p5, %p142_p7  ;;  %s156_s28 = sshll.u32 %s2127_s27, 4  ;;  %s157_s28 = int_to_ptr.vmem [resolvable:$true] %s156_s28 }
   0xe   : > { %s166_s5 = sshll.u32 %s3372_s2, 4  ;;  %s177_s9 = sshll.u32 %s3373_s3, 4  ;;  %s167_s5 = int_to_ptr.hbm [resolvable:$true] %s166_s5  ;;  %s178_s9 = int_to_ptr.hbm [resolvable:$true] %s177_s9 }
   0xf   : > { %p1850_p10 = pneg %p2202_p8  ;;  %s2128_s10 = smov [#allocation7]  }
  0x10   : > { %s168_s11 = sshll.u32 %s2128_s10, 4  ;;  %s2129_s12 = smov [#allocation8]   ;;  %s169_s11 = int_to_ptr.vmem [resolvable:$true] %s168_s11 }
  0x11   : > { %p2214_p11 = pnand %p1850_p10, %p43_p1  ;;  %s179_s13 = sshll.u32 %s2129_s12, 4  ;;  %s180_s13 = int_to_ptr.vmem [resolvable:$true] %s179_s13 }
  0x12   : > { %s2130_s14 = smov 128   ;;  %s2131_s20 = smov 8  }
  0x13   : > { %1853 = dma.hbm_to_vmem [thread:$0]  (!%p2214_p11), %s155_s25, 32, %s157_s28, [#allocation6]  }
  0x14   : > { %1856 = dma.hbm_to_vmem [thread:$0]  (!%p2214_p11), %s167_s5, 32, %s169_s11, [#allocation6]  }
  0x15   : > { %1859 = dma.hbm_to_vmem [thread:$0]  (!%p2214_p11), %s178_s9, 4096, %s180_s13, [#allocation9], %s2130_s14, %s2130_s14, %s2131_s20  }
  0x16   : > { %s2231_s23 = sadd.s32 1, %s2125_s18   ;;  %s29_s25 = sadd.s32 1, %s2121_s17 }
  0x17   : > { %s26_s24 = ssub.s32 %s2125_s18, %s2231_s23  ;;  %p36_p13 = scmp.ne.s32.totalorder %s2121_s17, %s2117_s16 }
  0x18   : > { %p27_p12 = scmp.eq.s32.totalorder %s26_s24, 0  ;;  %p37_p0 = scmp.eq.s32.totalorder %s2125_s18, 0 }
  0x19   : > { %p2244_p3 = por %p129_p2, %p36_p13  ;;  %p1871_p5 = scmp.lt.s32.totalorder %s2125_s18, 2 }
  0x1a   : > { %s2240_s27 = scalar_select %p27_p12, %s2121_s17, %s29_s25  }
  0x1b   : > { %s193_s29 = sand.u32 1, %s2121_s17   ;;  %s1832_s30 = sshll.u32 %s2125_s18, 7 }
  0x1c   : > { %p38_p7 = por %p37_p0, %p36_p13  ;;  %s1808_s5 = sshll.u32 %s193_s29, 7 }
  0x1d   : > { %s203_s8 = scalar_lea.hbm %s3370_s0, %s1832_s30  ;;  %s197_s10 = scalar_lea.vmem [#allocation2], %s1808_s5 }
  0x1e   : > { %s204_s9 = sshll.u32 %s203_s8, 4  ;;  %s206_s11 = sshll.u32 %s197_s10, 4  ;;  %s205_s9 = int_to_ptr.hbm [resolvable:$true] %s204_s9  ;;  %s207_s11 = int_to_ptr.vmem [resolvable:$true] %s206_s11 }
  0x1f   : > { %p2254_p10 = pnand %p1871_p5, %p38_p7  ;;  %s194_s13 = scalar_lea.sflag [#allocation3], %s193_s29 }
  0x20   : > { %s2021_s24 = sshra.s32 %s205_s9, 4  ;;  %s2028_s5 = scalar_lea.hbm %s3370_s0, 256  ;;  %s2022_s24 = int_to_ptr.hbm [resolvable:$true] %s2021_s24 }
  0x21   : > { %s2023_s25 = scalar_lea.hbm %s2022_s24, 128  ;;  %p2025_p11 = pneg %p2254_p10 }
  0x22   : > { %p2024_p2 = scmp.ne.s32.totalorder %s2022_s24, %s2023_s25  ;;  %p2029_p0 = scmp.lt.s32.totalorder %s2022_s24, %s3370_s0 }
  0x23   : > { %p2030_p5 = scmp.lt.s32.totalorder %s2028_s5, %s2023_s25 }
  0x24   : > { %p2026_p12 = pnand %p2025_p11, %p2024_p2 }
  0x25   : > { %p2031_p7 = por %p2030_p5, %p2029_p0 }
  0x26   : > { %p2027_p13 = pneg %p2026_p12 }
  0x28   : > { %p2032_p9 = pnand %p2031_p7, %p2027_p13 }
  0x2a   : > { %2035 = shalt.err (!%p2032_p9)
}
  0x2b   : > { %1863 = dma.hbm_to_vmem [thread:$0]  (!%p2254_p10), %s205_s9, 2048, %s207_s11, %s194_s13, %s2130_s14, %s2130_s14, %s2131_s20  }
  0x2c   : > { %218 = sbr.rel (%p2202_p8) target bundleno = 664 (0x298), region = 36 }
  0x31   : > { %s2274_s29 = sand.u32 1, %s2117_s16  }
  0x32   : > { %s1813_s10 = sshll.u32 %s2274_s29, 7  ;;  %s221_s24 = scalar_lea.sflag [#allocation3], %s2274_s29 }
  0x33   : > { %s2278_s25 = scalar_lea.vmem [#allocation2], %s1813_s10 }
  0x34   : > { %2096 = dma.done.wait (%p2189_p4), %s221_s24, 2048  }
  0x35   : > { %2098 = vsyncadd (%p2189_p4), %s221_s24, 4294965248 }
  0x36   : > { %2100 = dma.done.wait (%p43_p1), [#allocation6], 64  }
  0x37   : > { %2102 = vsyncadd (%p43_p1), [#allocation6], 4294967232 }
  0x38   : > { %2104 = dma.done.wait (%p43_p1), [#allocation9], 4096  }
  0x39   : > { %2106 = vsyncadd (%p43_p1), [#allocation9], 4294963200  ;;  %v269_v0 = vld [vmem:[%s2278_s25 + $0x20] sm:$0xff]  ;;  %v1820_v1 = vld [vmem:[%s2278_s25 + $0x28] sm:$0xff]  ;;  %s1817_s21 = sshll.u32 %s2274_s29, 6  ;;  %s1833_s14 = sshll.u32 %s2180_s19, 6 }
  0x3a   : > { %v267_v2 = vld [vmem:[%s2278_s25] sm:$0xff]  ;;  %v290_v3 = vadd.f32 %v1820_v1, %v269_v0  ;;  %v1818_v4 = vld [vmem:[%s2278_s25 + $0x8] sm:$0xff]  ;;  %v270_v9 = vld [vmem:[%s2278_s25 + $0x30] sm:$0xff]  ;;  %s3307_s26 = scalar_lea.vmem [#allocation10], %s1817_s21  ;;  %s1696_s11 = scalar_lea.hbm %s3374_s4, %s1833_s14 }
  0x3b   : > { %v271_v5 = vld [vmem:[%s2278_s25 + $0x40] sm:$0xff]  ;;  %v1822_v6 = vld [vmem:[%s2278_s25 + $0x48] sm:$0xff]  ;;  %v284_v7 = vadd.f32 %v1818_v4, %v267_v2  ;;  %v1821_v10 = vld [vmem:[%s2278_s25 + $0x38] sm:$0xff]  ;;  %s1697_s12 = sshll.u32 %s3307_s26, 4  ;;  %s1699_s13 = sshll.u32 %s1696_s11, 4  ;;  %s1698_s12 = int_to_ptr.vmem [resolvable:$true] %s1697_s12  ;;  %s1700_s13 = int_to_ptr.hbm [resolvable:$true] %s1699_s13 }
  0x3c   : > { %v296_v8 = vadd.f32 %v1822_v6, %v271_v5  ;;  %291 = vadd.xlane.f32.xlu1 %v290_v3  ;;  %v268_v11 = vld [vmem:[%s2278_s25 + $0x10] sm:$0xff]  ;;  %v1819_v12 = vld [vmem:[%s2278_s25 + $0x18] sm:$0xff]  ;;  %v293_v15 = vadd.f32 %v1821_v10, %v270_v9  ;;  %v2305_v18 = vld [vmem:[%s2278_s25 + $0x60] sm:$0xff]  ;;  %s1685_s19 = scalar_lea.sflag [#allocation4], %s2274_s29  ;;  %s2065_s30 = sshra.s32 %s1700_s13, 4  ;;  %s2066_s30 = int_to_ptr.hbm [resolvable:$true] %s2065_s30 }
  0x3d   : > { %285 = vadd.xlane.f32.xlu0 %v284_v7  ;;  %v272_v13 = vld [vmem:[%s2278_s25 + $0x50] sm:$0xff]  ;;  %v1823_v14 = vld [vmem:[%s2278_s25 + $0x58] sm:$0xff]  ;;  %v287_v16 = vadd.f32 %v1819_v12, %v268_v11  ;;  %v2308_v19 = vld [vmem:[%s2278_s25 + $0x68] sm:$0xff]  ;;  %s2067_s6 = scalar_lea.hbm %s2066_s30, 64  ;;  %s2071_s8 = scalar_lea.hbm %s3374_s4, 128 }
  0x3e   : > { %297 = vadd.xlane.f32.xlu2 %v296_v8  ;;  %v299_v17 = vadd.f32 %v1823_v14, %v272_v13  ;;  %v2311_v20 = vld [vmem:[%s2278_s25 + $0x70] sm:$0xff]  ;;  %v2314_v21 = vld [vmem:[%s2278_s25 + $0x78] sm:$0xff]  ;;  %v302_v22 = vadd.f32 %v2308_v19, %v2305_v18  ;;  %p2068_p1 = scmp.ne.s32.totalorder %s2066_s30, %s2067_s6  ;;  %p2072_p9 = scmp.lt.s32.totalorder %s2066_s30, %s3374_s4 }
  0x3f   : > { %v305_v23 = vadd.f32 %v2314_v21, %v2311_v20  ;;  %v543_v29 = vld [vmem:[#allocation8 + $0x78] sm:$0xff]  ;;  %p2073_p10 = scmp.lt.s32.totalorder %s2071_s8, %s2067_s6 }
  0x40   : > { %v2320_v30 = vand.u32 4294901760, %v543_v29  ;;  %p2069_p4 = pnand %p2068_p1, %p2244_p3 }
  0x41   : > { %p2074_p2 = por %p2073_p10, %p2072_p9 }
  0x42   : > { %v2327_v33 = vsub.f32 %v543_v29, %v2320_v30  ;;  %876 = vmatpush.msra.mxu3 %v2320_v30  ;;  %561 = vmatpush.msra.mxu0 %v2320_v30  ;;  %p2070_p8 = pneg %p2069_p4 }
  0x44   : > { %294 = vadd.xlane.f32.xlu1 %v293_v15  ;;  %v659_v38 = vand.u32 4294901760, %v2327_v33  ;;  %788 = vmatpush.msra.mxu2 %v2327_v33  ;;  %p2075_p11 = pnand %p2074_p2, %p2070_p8 }
  0x45   : > { %288 = vadd.xlane.f32.xlu0 %v287_v16 }
  0x46   : > { %300 = vadd.xlane.f32.xlu2 %v299_v17  ;;  %v660_v45 = vsub.f32 %v2327_v33, %v659_v38 }
  0x48   : > { %v661_v52 = vand.u32 4294901760, %v660_v45 }
  0x4a   : > { %662 = vmatpush.msra.mxu1 %v661_v52 }
  0x4d   : > { %303 = vadd.xlane.f32.xlu0 %v302_v22 }
  0x4e   : > { %306 = vadd.xlane.f32.xlu2 %v305_v23 }
  0xaf   : > { %v292_v24 = vpop.xlane.xlu1 %291 }
  0xb0   : > { %v286_v25 = vpop.xlane.xlu0 %285  ;;  %v310_v27 = vmul.f32 0.00390625, %v292_v24  ;;  %v541_v24 = vld [vmem:[#allocation8 + $0x68] sm:$0xff] }
  0xb1   : > { %v298_v26 = vpop.xlane.xlu2 %297  ;;  %v308_v28 = vmul.f32 0.00390625, %v286_v25 }
  0xb2   : > { %v2331_v34 = vsub.f32 %v269_v0, %v310_v27  ;;  %v2333_v35 = vsub.f32 %v1820_v1, %v310_v27  ;;  %v312_v39 = vmul.f32 0.00390625, %v298_v26  ;;  %v2405_v26 = vand.u32 4294901760, %v541_v24  ;;  %v540_v27 = vld [vmem:[#allocation8 + $0x60] sm:$0xff] }
  0xb3   : > { %v2322_v31 = vsub.f32 %v267_v2, %v308_v28  ;;  %v2324_v32 = vsub.f32 %v1818_v4, %v308_v28 }
  0xb4   : > { %v336_v48 = vmul.f32 %v2331_v34, %v2331_v34  ;;  %v337_v49 = vmul.f32 %v2333_v35, %v2333_v35  ;;  %v2352_v53 = vsub.f32 %v271_v5, %v312_v39  ;;  %v2354_v54 = vsub.f32 %v1822_v6, %v312_v39 }
  0xb5   : > { %v332_v36 = vmul.f32 %v2322_v31, %v2322_v31  ;;  %v333_v37 = vmul.f32 %v2324_v32, %v2324_v32  ;;  %v2411_v29 = vsub.f32 %v541_v24, %v2405_v26 }
  0xb6   : > { %v354_v61 = vadd.f32 %v337_v49, %v336_v48  ;;  %v340_v6 = vmul.f32 %v2352_v53, %v2352_v53  ;;  %v341_v7 = vmul.f32 %v2354_v54, %v2354_v54  ;;  %v537_v49 = vld [vmem:[#allocation8 + $0x48] sm:$0xff] }
  0xb7   : > { %v295_v40 = vpop.xlane.xlu1 %294  ;;  %v348_v41 = vadd.f32 %v333_v37, %v332_v36  ;;  %v2414_v36 = vand.u32 4294901760, %v540_v27  ;;  %v539_v37 = vld [vmem:[#allocation8 + $0x58] sm:$0xff] }
  0xb8   : > { %v311_v42 = vmul.f32 0.00390625, %v295_v40  ;;  %v289_v43 = vpop.xlane.xlu0 %288  ;;  %v671_v40 = vand.u32 4294901760, %v2411_v29 }
  0xb9   : > { %v301_v44 = vpop.xlane.xlu2 %300  ;;  %v309_v46 = vmul.f32 0.00390625, %v289_v43  ;;  %349 = vadd.xlane.f32.xlu1 %v348_v41  ;;  %v2423_v41 = vsub.f32 %v540_v27, %v2414_v36  ;;  %v538_v43 = vld [vmem:[#allocation8 + $0x50] sm:$0xff] }
  0xba   : > { %v313_v47 = vmul.f32 0.00390625, %v301_v44  ;;  %v2348_v50 = vsub.f32 %v270_v9, %v311_v42  ;;  %v2350_v51 = vsub.f32 %v1821_v10, %v311_v42  ;;  %v2426_v42 = vand.u32 4294901760, %v539_v37 }
  0xbb   : > { %v2356_v55 = vsub.f32 %v268_v11, %v309_v46  ;;  %v2358_v56 = vsub.f32 %v1819_v12, %v309_v46  ;;  %v672_v45 = vsub.f32 %v2411_v29, %v671_v40  ;;  %v677_v46 = vand.u32 4294901760, %v2423_v41 }
  0xbc   : > { %v2360_v57 = vsub.f32 %v272_v13, %v313_v47  ;;  %v2362_v58 = vsub.f32 %v1823_v14, %v313_v47  ;;  %v338_v59 = vmul.f32 %v2348_v50, %v2348_v50  ;;  %v339_v60 = vmul.f32 %v2350_v51, %v2350_v51 }
  0xbd   : > { %v334_v62 = vmul.f32 %v2356_v55, %v2356_v55  ;;  %v335_v63 = vmul.f32 %v2358_v56, %v2358_v56  ;;  %v360_v13 = vadd.f32 %v341_v7, %v340_v6  ;;  %v2435_v47 = vsub.f32 %v539_v37, %v2426_v42 }
  0xbe   : > { %3416 = vst [vmem:[#allocation15_spill] sm:$0xff] %v2362_v58  ;;  %v357_v0 = vadd.f32 %v339_v60, %v338_v59  ;;  %v342_v4 = vmul.f32 %v2360_v57, %v2360_v57  ;;  %v343_v5 = vmul.f32 %v2362_v58, %v2362_v58  ;;  %v2439_v48 = vand.u32 4294901760, %v538_v43 }
  0xbf   : > { %v351_v1 = vadd.f32 %v335_v63, %v334_v62  ;;  %v673_v52 = vand.u32 4294901760, %v672_v45  ;;  %v678_v59 = vsub.f32 %v2423_v41, %v677_v46  ;;  %v683_v60 = vand.u32 4294901760, %v2435_v47  ;;  %v536_v63 = vld [vmem:[#allocation8 + $0x40] sm:$0xff] }
  0xc0   : > { %v304_v2 = vpop.xlane.xlu0 %303  ;;  %358 = vadd.xlane.f32.xlu2 %v357_v0  ;;  %v363_v12 = vadd.f32 %v343_v5, %v342_v4  ;;  %v2450_v62 = vsub.f32 %v538_v43, %v2439_v48  ;;  %v535_v5 = vld [vmem:[#allocation8 + $0x38] sm:$0xff] }
  0xc1   : > { %v307_v3 = vpop.xlane.xlu2 %306  ;;  %v314_v8 = vmul.f32 0.00390625, %v304_v2  ;;  %355 = vadd.xlane.f32.xlu1 %v354_v61  ;;  %352 = vadd.xlane.f32.xlu0 %v351_v1  ;;  %v2447_v61 = vand.u32 4294901760, %v537_v49  ;;  %v679_v0 = vand.u32 4294901760, %v678_v59  ;;  %v684_v1 = vsub.f32 %v2435_v47, %v683_v60 }
  0xc2   : > { %v315_v9 = vmul.f32 0.00390625, %v307_v3  ;;  %v2460_v3 = vand.u32 4294901760, %v536_v63  ;;  %v689_v4 = vand.u32 4294901760, %v2450_v62 }
  0xc3   : > { %v2381_v10 = vsub.f32 %v2305_v18, %v314_v8  ;;  %v2384_v11 = vsub.f32 %v2308_v19, %v314_v8  ;;  %v2458_v2 = vsub.f32 %v537_v49, %v2447_v61  ;;  %v685_v6 = vand.u32 4294901760, %v684_v1  ;;  %v532_v49 = vld [vmem:[#allocation8 + $0x20] sm:$0xff] }
  0xc4   : > { %v2387_v14 = vsub.f32 %v2311_v20, %v315_v9  ;;  %v2390_v15 = vsub.f32 %v2314_v21, %v315_v9  ;;  %v542_v21 = vld [vmem:[#allocation8 + $0x70] sm:$0xff]  ;;  %v2467_v8 = vsub.f32 %v536_v63, %v2460_v3  ;;  %v2469_v9 = vand.u32 4294901760, %v535_v5 }
  0xc5   : > { %3417 = vst [vmem:[#allocation16_spill] sm:$0xff] %v2384_v11  ;;  %v344_v16 = vmul.f32 %v2381_v10, %v2381_v10  ;;  %v345_v17 = vmul.f32 %v2384_v11, %v2384_v11  ;;  %v2400_v23 = vand.u32 4294901760, %v542_v21  ;;  %v695_v7 = vand.u32 4294901760, %v2458_v2  ;;  %v546_v11 = vld [vmem:[#allocation8 + $0x90] sm:$0xff] }
  0xc6   : > { %3418 = vst [vmem:[#allocation17_spill] sm:$0xff] %v2390_v15  ;;  %v346_v18 = vmul.f32 %v2387_v14, %v2387_v14  ;;  %v347_v19 = vmul.f32 %v2390_v15, %v2390_v15  ;;  %v2510_v63 = vand.u32 4294901760, %v532_v49 }
  0xc7   : > { %v366_v22 = vadd.f32 %v345_v17, %v344_v16  ;;  %v2403_v25 = vsub.f32 %v542_v21, %v2400_v23  ;;  %878 = vmatpush.msra.mxu3 %v2400_v23  ;;  %563 = vmatpush.msra.mxu0 %v2400_v23  ;;  %v3382_v16 = vand.u32 4294901760, %v2467_v8  ;;  %v2482_v17 = vsub.f32 %v535_v5, %v2469_v9  ;;  %v534_v21 = vld [vmem:[#allocation8 + $0x30] sm:$0xff] }
  0xc8   : > { %v369_v20 = vadd.f32 %v347_v19, %v346_v18  ;;  %v2492_v24 = vand.u32 4294901760, %v534_v21 }
  0xc9   : > { %364 = vadd.xlane.f32.xlu1 %v363_v12  ;;  %361 = vadd.xlane.f32.xlu0 %v360_v13  ;;  %v665_v28 = vand.u32 4294901760, %v2403_v25  ;;  %v690_v12 = vsub.f32 %v2450_v62, %v689_v4  ;;  %v696_v13 = vsub.f32 %v2458_v2, %v695_v7  ;;  %v702_v19 = vsub.f32 %v2467_v8, %v3382_v16 }
  0xca   : > { %367 = vadd.xlane.f32.xlu2 %v366_v22  ;;  %791 = vmatpush.msra.mxu2 %v2403_v25  ;;  %v2499_v43 = vsub.f32 %v534_v21, %v2492_v24 }
  0xcb   : > { %880 = vmatpush.msra.mxu3 %v2405_v26  ;;  %565 = vmatpush.msra.mxu0 %v2405_v26  ;;  %v666_v39 = vsub.f32 %v2403_v25, %v665_v28  ;;  %v691_v22 = vand.u32 4294901760, %v690_v12  ;;  %v697_v18 = vand.u32 4294901760, %v696_v13  ;;  %v703_v27 = vand.u32 4294901760, %v702_v19  ;;  %v530_v13 = vld [vmem:[#allocation8 + $0x10] sm:$0xff] }
  0xcc   : > { %794 = vmatpush.msra.mxu2 %v2411_v29 }
  0xcd   : > { %882 = vmatpush.msra.mxu3 %v2414_v36  ;;  %567 = vmatpush.msra.mxu0 %v2414_v36  ;;  %v667_v44 = vand.u32 4294901760, %v666_v39  ;;  %v533_v39 = vld [vmem:[#allocation8 + $0x28] sm:$0xff] }
  0xce   : > { %797 = vmatpush.msra.mxu2 %v2423_v41 }
  0xcf   : > { %884 = vmatpush.msra.mxu3 %v2426_v42  ;;  %569 = vmatpush.msra.mxu0 %v2426_v42 }
  0xd0   : > { %668 = vmatpush.msra.mxu1 %v667_v44  ;;  %800 = vmatpush.msra.mxu2 %v2435_v47  ;;  %v2501_v44 = vand.u32 4294901760, %v533_v39  ;;  %v3419_v47 = vand.u32 4294901760, %v2467_v8 }
  0xd1   : > { %370 = vadd.xlane.f32.xlu0 %v369_v20  ;;  %886 = vmatpush.msra.mxu3 %v2439_v48  ;;  %v3378_v20 = vand.u32 4294901760, %v2482_v17 }
  0xd2   : > { %571 = vmatpush.msra.mxu0 %v2439_v48  ;;  %674 = vmatpush.msra.mxu1 %v673_v52  ;;  %v3377_v52 = vand.u32 4294901760, %v2499_v43  ;;  %v2507_v59 = vsub.f32 %v533_v39, %v2501_v44 }
  0xd3   : > { %803 = vmatpush.msra.mxu2 %v2450_v62  ;;  %888 = vmatpush.msra.mxu3 %v2447_v61  ;;  %v708_v37 = vsub.f32 %v2482_v17, %v3378_v20 }
  0xd4   : > { %680 = vmatpush.msra.mxu1 %v679_v0  ;;  %573 = vmatpush.msra.mxu0 %v2447_v61  ;;  %v531_v0 = vld [vmem:[#allocation8 + $0x18] sm:$0xff]  ;;  %v714_v1 = vsub.f32 %v2499_v43, %v3377_v52  ;;  %v3375_v5 = vand.u32 4294901760, %v2507_v59 }
  0xd5   : > { %806 = vmatpush.msra.mxu2 %v2458_v2  ;;  %890 = vmatpush.msra.mxu3 %v2460_v3  ;;  %v709_v45 = vand.u32 4294901760, %v708_v37  ;;  %v2522_v12 = vand.u32 4294901760, %v531_v0  ;;  %v529_v37 = vld [vmem:[#allocation8 + $0x8] sm:$0xff] }
  0xd6   : > { %686 = vmatpush.msra.mxu1 %v685_v6  ;;  %575 = vmatpush.msra.mxu0 %v2460_v3  ;;  %v2519_v6 = vsub.f32 %v532_v49, %v2510_v63 }
  0xd7   : > { %809 = vmatpush.msra.mxu2 %v2467_v8  ;;  %892 = vmatpush.msra.mxu3 %v2469_v9  ;;  %v2531_v21 = vsub.f32 %v531_v0, %v2522_v12  ;;  %v2543_v0 = vand.u32 4294901760, %v529_v37 }
  0xd8   : > { %577 = vmatpush.msra.mxu0 %v2469_v9  ;;  %692 = vmatpush.msra.mxu1 %v691_v22  ;;  %v715_v22 = vand.u32 4294901760, %v714_v1  ;;  %v3376_v19 = vand.u32 4294901760, %v2519_v6 }
  0xd9   : > { %812 = vmatpush.msra.mxu2 %v2482_v17  ;;  %894 = vmatpush.msra.mxu3 %v2492_v24  ;;  %v3379_v49 = vand.u32 4294901760, %v2531_v21 }
  0xda   : > { %698 = vmatpush.msra.mxu1 %v697_v18  ;;  %579 = vmatpush.msra.mxu0 %v2492_v24  ;;  %v720_v18 = vsub.f32 %v2507_v59, %v3375_v5  ;;  %v528_v5 = vld [vmem:[#allocation8] sm:$0xff] }
  0xdb   : > { %815 = vmatpush.msra.mxu2 %v2499_v43  ;;  %896 = vmatpush.msra.mxu3 %v2501_v44 }
  0xdc   : > { %704 = vmatpush.msra.mxu1 %v703_v27  ;;  %581 = vmatpush.msra.mxu0 %v2501_v44  ;;  %v2534_v27 = vand.u32 4294901760, %v530_v13  ;;  %v721_v39 = vand.u32 4294901760, %v720_v18  ;;  %v732_v18 = vsub.f32 %v2531_v21, %v3379_v49 }
  0xdd   : > { %818 = vmatpush.msra.mxu2 %v2507_v59  ;;  %898 = vmatpush.msra.mxu3 %v2510_v63 }
  0xde   : > { %710 = vmatpush.msra.mxu1 %v709_v45  ;;  %583 = vmatpush.msra.mxu0 %v2510_v63  ;;  %v726_v45 = vsub.f32 %v2519_v6, %v3376_v19  ;;  %v2546_v1 = vsub.f32 %v530_v13, %v2534_v27  ;;  %v2554_v19 = vsub.f32 %v529_v37, %v2543_v0  ;;  %v2558_v13 = vand.u32 4294901760, %v528_v5 }
  0xdf   : > { %821 = vmatpush.msra.mxu2 %v2519_v6  ;;  %900 = vmatpush.msra.mxu3 %v2522_v12  ;;  %v733_v20 = vand.u32 4294901760, %v732_v18 }
  0xe0   : > { %585 = vmatpush.msra.mxu0 %v2522_v12  ;;  %716 = vmatpush.msra.mxu1 %v715_v22  ;;  %v727_v22 = vand.u32 4294901760, %v726_v45  ;;  %v3381_v52 = vand.u32 4294901760, %v2546_v1  ;;  %v2567_v37 = vsub.f32 %v528_v5, %v2558_v13 }
  0xe1   : > { %824 = vmatpush.msra.mxu2 %v2531_v21  ;;  %902 = vmatpush.msra.mxu3 %v2534_v27 }
  0xe2   : > { %587 = vmatpush.msra.mxu0 %v2534_v27  ;;  %722 = vmatpush.msra.mxu1 %v721_v39  ;;  %v3380_v39 = vand.u32 4294901760, %v2554_v19  ;;  %v738_v45 = vsub.f32 %v2546_v1, %v3381_v52  ;;  %v749_v49 = vand.u32 4294901760, %v2567_v37 }
  0xe3   : > { %827 = vmatpush.msra.mxu2 %v2546_v1  ;;  %904 = vmatpush.msra.mxu3 %v2543_v0 }
  0xe4   : > { %728 = vmatpush.msra.mxu1 %v727_v22  ;;  %589 = vmatpush.msra.mxu0 %v2543_v0  ;;  %v744_v22 = vsub.f32 %v2554_v19, %v3380_v39  ;;  %v739_v18 = vand.u32 4294901760, %v738_v45 }
  0xe5   : > { %830 = vmatpush.msra.mxu2 %v2554_v19  ;;  %906 = vmatpush.msra.mxu3 %v2558_v13 }
  0xe6   : > { %734 = vmatpush.msra.mxu1 %v733_v20  ;;  %591 = vmatpush.msra.mxu0 %v2558_v13  ;;  %v745_v5 = vand.u32 4294901760, %v744_v22  ;;  %v750_v20 = vsub.f32 %v2567_v37, %v749_v49 }
  0xe7   : > { %833 = vmatpush.msra.mxu2 %v2567_v37 }
  0xe8   : > { %959 = vmatpush.msrb.mxu0 %v659_v38  ;;  %740 = vmatpush.msra.mxu1 %v739_v18  ;;  %v751_v45 = vand.u32 4294901760, %v750_v20  ;;  %v3423_v20 = vand.u32 4294901760, %v2519_v6  ;;  %v2642_v6 = vld [vmem:[#allocation7] sm:$0x3] }
  0xea   : > { %963 = vmatpush.msrb.mxu0 %v665_v28  ;;  %746 = vmatpush.msra.mxu1 %v745_v5 }
  0xec   : > { %967 = vmatpush.msrb.mxu0 %v671_v40  ;;  %752 = vmatpush.msra.mxu1 %v751_v45 }
  0xee   : > { %971 = vmatpush.msrb.mxu0 %v677_v46  ;;  %1054 = vmatpush.msrb.mxu1 %v2320_v30 }
  0xf0   : > { %975 = vmatpush.msrb.mxu0 %v683_v60  ;;  %1056 = vmatpush.msrb.mxu1 %v2400_v23 }
  0xf2   : > { %979 = vmatpush.msrb.mxu0 %v689_v4  ;;  %1058 = vmatpush.msrb.mxu1 %v2405_v26  ;;  %v3420_v26 = vand.u32 4294901760, %v2482_v17 }
  0xf4   : > { %983 = vmatpush.msrb.mxu0 %v695_v7  ;;  %1060 = vmatpush.msrb.mxu1 %v2414_v36  ;;  %v3421_v36 = vand.u32 4294901760, %v2499_v43  ;;  %v2621_v43 = vld [vmem:[#allocation5] sm:$0x3] }
  0xf6   : > { %987 = vmatpush.msrb.mxu0 %v3419_v47  ;;  %1062 = vmatpush.msrb.mxu1 %v2426_v42  ;;  %v2649_v47 = vperm.slane %v2621_v43, 0 }
  0xf8   : > { %991 = vmatpush.msrb.mxu0 %v3420_v26  ;;  %1064 = vmatpush.msrb.mxu1 %v2439_v48  ;;  %v559_v26 = vld [vmem:[#allocation8 + $0xf8] sm:$0xff] }
  0xfa   : > { %995 = vmatpush.msrb.mxu0 %v3421_v36  ;;  %1066 = vmatpush.msrb.mxu1 %v2447_v61  ;;  %v2660_v36 = vperm.slane %v2642_v6, 0 }
  0xfc   : > { %1068 = vmatpush.msrb.mxu1 %v2460_v3 }
  0xfe   : > { %1070 = vmatpush.msrb.mxu1 %v2469_v9 }
 0x100   : > { %1072 = vmatpush.msrb.mxu1 %v2492_v24 }
 0x102   : > { %1074 = vmatpush.msrb.mxu1 %v2501_v44 }
 0x104   : > { %1076 = vmatpush.msrb.mxu1 %v2510_v63 }
 0x106   : > { %1078 = vmatpush.msrb.mxu1 %v2522_v12 }
 0x108   : > { %1080 = vmatpush.msrb.mxu1 %v2534_v27 }
 0x10a   : > { %1082 = vmatpush.msrb.mxu1 %v2543_v0 }
 0x10c   : > { %1084 = vmatpush.msrb.mxu1 %v2558_v13 }
 0x12c   : > { %v350_v39 = vpop.xlane.xlu1 %349 }
 0x12d   : > { %v372_v52 = vmul.f32 0.00390625, %v350_v39  ;;  %v3422_v39 = vand.u32 4294901760, %v2507_v59 }
 0x12f   : > { %v380_v16 = vadd.f32 1e-05, %v372_v52  ;;  %999 = vmatpush.msrb.mxu0 %v3422_v39  ;;  %v2673_v39 = vld [vmem:[#allocation8 + $0xe8] sm:$0xff] }
 0x131   : > { %1915 = vrsqrt.f32 %v380_v16  ;;  %vm394_vm1 = vweird.f32 %v380_v16  ;;  %1003 = vmatpush.msrb.mxu0 %v3423_v20 }
 0x133   : > { %v359_v33 = vpop.xlane.xlu2 %358 }
 0x134   : > { %v375_v38 = vmul.f32 0.00390625, %v359_v33  ;;  %v356_v25 = vpop.xlane.xlu1 %355  ;;  %v353_v28 = vpop.xlane.xlu0 %352 }
 0x135   : > { %v374_v29 = vmul.f32 0.00390625, %v356_v25  ;;  %v373_v40 = vmul.f32 0.00390625, %v353_v28  ;;  %v3424_v28 = vand.u32 4294901760, %v2531_v21 }
 0x136   : > { %v2597_v30 = vadd.f32 1e-05, %v375_v38 }
 0x137   : > { %v1916_v41 = vpop.eup %1915  ;;  %v2600_v23 = vadd.f32 1e-05, %v374_v29  ;;  %v2602_v46 = vadd.f32 1e-05, %v373_v40  ;;  %1007 = vmatpush.msrb.mxu0 %v3424_v28 }
 0x138   : > { %v389_v60 = vmul.f32 %v1916_v41, %v380_v16  ;;  %1917 = vrsqrt.f32 %v2597_v30  ;;  %vm395_vm0 = vweird.f32 %v1916_v41  ;;  %vm424_vm9 = vweird.f32 %v2597_v30 }
 0x139   : > { %1919 = vrsqrt.f32 %v2600_v23  ;;  %vm396_vm2 = vmor %vm394_vm1, %vm395_vm0  ;;  %vm414_vm3 = vweird.f32 %v2600_v23  ;;  %vm404_vm6 = vweird.f32 %v2602_v46 }
 0x13a   : > { %v390_v62 = vmul.f32 %v1916_v41, %v389_v60  ;;  %1921 = vrsqrt.f32 %v2602_v46 }
 0x13c   : > { %v391_v2 = vmul.f32 0.5, %v390_v62  ;;  %v365_v4 = vpop.xlane.xlu1 %364  ;;  %v362_v7 = vpop.xlane.xlu0 %361  ;;  %v3425_v62 = vand.u32 4294901760, %v2546_v1 }
 0x13d   : > { %v377_v8 = vmul.f32 0.00390625, %v365_v4  ;;  %v368_v42 = vpop.xlane.xlu2 %367  ;;  %v376_v52 = vmul.f32 0.00390625, %v362_v7  ;;  %v558_v4 = vld [vmem:[#allocation8 + $0xf0] sm:$0xff]  ;;  %v3426_v7 = vand.u32 4294901760, %v2554_v19 }
 0x13e   : > { %v2618_v17 = vpop.eup %1917  ;;  %v392_v22 = vsub.f32 1.5, %v391_v2  ;;  %v378_v18 = vmul.f32 0.00390625, %v368_v42  ;;  %1011 = vmatpush.msrb.mxu0 %v3425_v62  ;;  %v2667_v42 = vand.u32 4294901760, %v559_v26  ;;  %v2683_v63 = vand.u32 4294901760, %v558_v4 }
 0x13f   : > { %v1920_v48 = vpop.eup %1919  ;;  %v419_v61 = vmul.f32 %v2618_v17, %v2597_v30  ;;  %v2625_v5 = vadd.f32 1e-05, %v377_v8  ;;  %v2634_v3 = vadd.f32 1e-05, %v376_v52  ;;  %vm425_vm10 = vweird.f32 %v2618_v17 }
 0x140   : > { %v2629_v59 = vpop.eup %1921  ;;  %v393_v45 = vmul.f32 %v1916_v41, %v392_v22  ;;  %v409_v33 = vmul.f32 %v1920_v48, %v2600_v23  ;;  %v2632_v38 = vadd.f32 1e-05, %v378_v18  ;;  %1015 = vmatpush.msrb.mxu0 %v3426_v7  ;;  %vm415_vm4 = vweird.f32 %v1920_v48  ;;  %1119 = vmatpush.msrb.mxu2 %v2667_v42  ;;  %vm426_vm11 = vmor %vm424_vm9, %vm425_vm10 }
 0x141   : > { %v420_v16 = vmul.f32 %v2618_v17, %v419_v61  ;;  %v399_v25 = vmul.f32 %v2629_v59, %v2602_v46  ;;  %1923 = vrsqrt.f32 %v2625_v5  ;;  %vm405_vm5 = vweird.f32 %v2629_v59  ;;  %vm416_vm7 = vmor %vm414_vm3, %vm415_vm4 }
 0x142   : > { %v2646_v29 = vsel %vm396_vm2, %v1916_v41, %v393_v45  ;;  %v410_v40 = vmul.f32 %v1920_v48, %v409_v33  ;;  %1925 = vrsqrt.f32 %v2632_v38  ;;  %1019 = vmatpush.msrb.mxu0 %v749_v49  ;;  %vm406_vm8 = vmor %vm404_vm6, %vm405_vm5  ;;  %1121 = vmatpush.msrb.mxu2 %v2683_v63  ;;  %v2704_v23 = vand.u32 4294901760, %v2673_v39 }
 0x143   : > { %v468_v9 = vmul.f32 %v2646_v29, %v2322_v31  ;;  %v400_v60 = vmul.f32 %v2629_v59, %v399_v25  ;;  %1927 = vrsqrt.f32 %v2634_v3  ;;  %v421_v2 = vmul.f32 0.5, %v420_v16 }
 0x144   : > { %v411_v21 = vmul.f32 0.5, %v410_v40  ;;  %v371_v41 = vpop.xlane.xlu0 %370  ;;  %1123 = vmatpush.msrb.mxu2 %v2704_v23  ;;  %v2731_v62 = vsub.f32 %v558_v4, %v2683_v63  ;;  %vm434_vm12 = vweird.f32 %v2634_v3  ;;  %vm444_vm14 = vweird.f32 %v2625_v5 }
 0x145   : > { %v401_v24 = vmul.f32 0.5, %v400_v60  ;;  %v379_v31 = vmul.f32 0.00390625, %v371_v41  ;;  %v490_v8 = vmul.f32 %v2649_v47, %v468_v9  ;;  %v422_v61 = vsub.f32 1.5, %v421_v2 }
 0x146   : > { %v412_v1 = vsub.f32 1.5, %v411_v21  ;;  %v2728_v60 = vsub.f32 %v559_v26, %v2667_v42  ;;  %vm454_vm1 = vweird.f32 %v2632_v38 }
 0x147   : > { %v2670_v52 = vpop.eup %1923  ;;  %v402_v44 = vsub.f32 1.5, %v401_v24  ;;  %v2692_v46 = vadd.f32 1e-05, %v379_v31  ;;  %v512_v33 = vadd.f32 %v2660_v36, %v490_v8  ;;  %v423_v30 = vmul.f32 %v2618_v17, %v422_v61 }
 0x148   : > { %v2677_v19 = vpop.eup %1925  ;;  %v413_v22 = vmul.f32 %v1920_v48, %v412_v1  ;;  %v439_v18 = vmul.f32 %v2670_v52, %v2625_v5  ;;  %v3388_v26 = vand.u32 4294901760, %v2728_v60  ;;  %v3386_v8 = vand.u32 4294901760, %v2731_v62 }
 0x149   : > { %v403_v49 = vmul.f32 %v2629_v59, %v402_v44  ;;  %v449_v37 = vmul.f32 %v2677_v19, %v2632_v38  ;;  %v2694_v20 = vpop.eup %1927  ;;  %1929 = vrsqrt.f32 %v2692_v46  ;;  %v2724_v27 = vand.u32 4294901760, %v512_v33 }
 0x14a   : > { %v2696_v45 = vsel %vm416_vm7, %v1920_v48, %v413_v22  ;;  %v440_v12 = vmul.f32 %v2670_v52, %v439_v18  ;;  %v429_v40 = vmul.f32 %v2694_v20, %v2634_v3  ;;  %v2739_v24 = vsel %vm426_vm11, %v2618_v17, %v423_v30 }
 0x14b   : > { %v2709_v16 = vsel %vm406_vm8, %v2629_v59, %v403_v49  ;;  %v450_v48 = vmul.f32 %v2677_v19, %v449_v37  ;;  %v472_v25 = vmul.f32 %v2696_v45, %v2331_v34  ;;  %754 = vmatmul.f32.vlgmr.msra.gmra.mxu1 %v2724_v27  ;;  %v593_v0 = vsub.f32 %v512_v33, %v2724_v27 }
 0x14c   : > { %v470_v28 = vmul.f32 %v2709_v16, %v2356_v55  ;;  %v441_v9 = vmul.f32 0.5, %v440_v12  ;;  %v430_v59 = vmul.f32 %v2694_v20, %v429_v40  ;;  %vm435_vm13 = vweird.f32 %v2694_v20  ;;  %1434 = vmatpush.msra.mxu1 %v2667_v42 }
 0x14d   : > { %v451_v55 = vmul.f32 0.5, %v450_v48  ;;  %v494_v2 = vmul.f32 %v2649_v47, %v472_v25  ;;  %836 = vmatmul.f32.vlgmr.msra.gmra.mxu2 %v593_v0  ;;  %v594_v4 = vand.u32 4294901760, %v593_v0  ;;  %v1218_v17 = vsub.f32 %v2728_v60, %v3388_v26  ;;  %vm2764_vm0 = vmor %vm434_vm12, %vm435_vm13  ;;  %v556_v48 = vld [vmem:[#allocation8 + $0xe0] sm:$0xff]  ;;  %v555_v25 = vld [vmem:[#allocation8 + $0xd8] sm:$0xff] }
 0x14e   : > { %v492_v34 = vmul.f32 %v2649_v47, %v470_v28  ;;  %v431_v21 = vmul.f32 0.5, %v430_v59  ;;  %v442_v13 = vsub.f32 1.5, %v441_v9  ;;  %1436 = vmatpush.msra.mxu1 %v2683_v63  ;;  %vm445_vm15 = vweird.f32 %v2670_v52 }
 0x14f   : > { %v452_v1 = vsub.f32 1.5, %v451_v55  ;;  %v2752_v44 = vpop.eup %1929  ;;  %910 = vmatmul.f32.vlgmr.msra.gmra.mxu3 %v594_v4  ;;  %v516_v18 = vadd.f32 %v2660_v36, %v494_v2  ;;  %v474_v61 = vmul.f32 %v2739_v24, %v2348_v50  ;;  %v595_v37 = vsub.f32 %v593_v0, %v594_v4  ;;  %vm2777_vm3 = vmor %vm444_vm14, %vm445_vm15 }
 0x150   : > { %v514_v41 = vadd.f32 %v2660_v36, %v492_v34  ;;  %v432_v31 = vsub.f32 1.5, %v431_v21  ;;  %v1219_v12 = vand.u32 4294901760, %v1218_v17  ;;  %1438 = vmatpush.msra.mxu1 %v2704_v23  ;;  %v443_v33 = vmul.f32 %v2670_v52, %v442_v13  ;;  %v554_v21 = vld [vmem:[#allocation8 + $0xd0] sm:$0xff] }
 0x151   : > { %vm455_vm2 = vweird.f32 %v2677_v19  ;;  %v453_v28 = vmul.f32 %v2677_v19, %v452_v1  ;;  %v459_v40 = vmul.f32 %v2752_v44, %v2692_v46  ;;  %v596_v30 = vand.u32 4294901760, %v595_v37 }
 0x152   : > { %v2745_v7 = vand.u32 4294901760, %v514_v41  ;;  %v433_v22 = vmul.f32 %v2694_v20, %v432_v31  ;;  %1220 = vmatpush.msrb.mxu3 %v1219_v12  ;;  %v1224_v9 = vsub.f32 %v2731_v62, %v3386_v8  ;;  %v2793_v34 = vand.u32 4294901760, %v516_v18  ;;  %vm2833_vm4 = vmor %vm454_vm1, %vm455_vm2 }
 0x153   : > { %v2797_v55 = vsub.f32 %v2673_v39, %v2704_v23  ;;  %597 = vmatmul.f32.vlgmr.msra.gmra.mxu0 %v596_v30  ;;  %v2801_v2 = vand.u32 4294901760, %v555_v25  ;;  %v496_v13 = vmul.f32 %v2649_v47, %v474_v61  ;;  %v553_v61 = vld [vmem:[#allocation8 + $0xc8] sm:$0xff]  ;;  %vm464_vm5 = vweird.f32 %v2692_v46 }
 0x154   : > { %3427 = vst [vmem:[#allocation18_spill] sm:$0xff] %v2745_v7  ;;  %v601_v50 = vsub.f32 %v514_v41, %v2745_v7  ;;  %v2790_v59 = vsel %vm2764_vm0, %v2694_v20, %v433_v22  ;;  %758 = vmatmul.f32.gmra.mxu1 %v2745_v7  ;;  %v1225_v0 = vand.u32 4294901760, %v1224_v9  ;;  %v2799_v41 = vand.u32 4294901760, %v556_v48  ;;  %1346 = vmatpush.msra.mxu0 %v2728_v60 }
 0x155   : > { %3432 = vst [vmem:[#allocation19_spill] sm:$0xff] %v2790_v59  ;;  %v2807_v20 = vsel %vm2777_vm3, %v2670_v52, %v443_v33  ;;  %v3385_v4 = vand.u32 4294901760, %v2797_v55  ;;  %v609_v39 = vsub.f32 %v516_v18, %v2793_v34  ;;  %v518_v17 = vadd.f32 %v2660_v36, %v496_v13 }
 0x156   : > { %v602_v5 = vand.u32 4294901760, %v601_v50  ;;  %3433 = vst [vmem:[#allocation20_spill] sm:$0xff] %v2793_v34  ;;  %841 = vmatmul.f32.gmra.mxu2 %v601_v50  ;;  %1226 = vmatpush.msrb.mxu3 %v1225_v0  ;;  %v2814_v1 = vsub.f32 %v556_v48, %v2799_v41  ;;  %v2818_v22 = vsub.f32 %v555_v25, %v2801_v2  ;;  %v2820_v52 = vand.u32 4294901760, %v554_v21 }
 0x157   : > { %3434 = vst [vmem:[#allocation21_spill] sm:$0xff] %v2807_v20  ;;  %1125 = vmatpush.msrb.mxu2 %v2799_v41  ;;  %v476_v49 = vmul.f32 %v2790_v59, %v2352_v53  ;;  %v460_v18 = vmul.f32 %v2752_v44, %v459_v40  ;;  %v1230_v37 = vsub.f32 %v2797_v55, %v3385_v4  ;;  %v610_v3 = vand.u32 4294901760, %v609_v39 }
 0x158   : > { %v603_v31 = vsub.f32 %v601_v50, %v602_v5  ;;  %916 = vmatmul.f32.gmra.mxu3 %v602_v5  ;;  %1349 = vmatpush.msra.mxu0 %v2731_v62  ;;  %v3384_v53 = vand.u32 4294901760, %v2814_v1  ;;  %v3383_v50 = vand.u32 4294901760, %v2818_v22  ;;  %v2841_v48 = vsub.f32 %v554_v21, %v2820_v52  ;;  %v552_v5 = vld [vmem:[#allocation8 + $0xc0] sm:$0xff] }
 0x159   : > { %1127 = vmatpush.msrb.mxu2 %v2801_v2  ;;  %1440 = vmatpush.msra.mxu1 %v2799_v41  ;;  %v1231_v25 = vand.u32 4294901760, %v1230_v37  ;;  %v2844_v40 = vand.u32 4294901760, %v518_v17  ;;  %v2846_v38 = vand.u32 4294901760, %v553_v61  ;;  %v478_v21 = vmul.f32 %v2807_v20, %v2360_v57  ;;  %v551_v37 = vld [vmem:[#allocation8 + $0xb8] sm:$0xff]  ;;  %v545_v20 = vld [vmem:[#allocation8 + $0x88] sm:$0xff] }
 0x15a   : > { %v604_v33 = vand.u32 4294901760, %v603_v31  ;;  %1352 = vmatpush.msra.mxu0 %v2797_v55  ;;  %v1236_v30 = vsub.f32 %v2814_v1, %v3384_v53  ;;  %v1242_v9 = vsub.f32 %v2818_v22, %v3383_v50  ;;  %v2862_v0 = vsel %vm2833_vm4, %v2677_v19, %v453_v28  ;;  %v550_v50 = vld [vmem:[#allocation8 + $0xb0] sm:$0xff] }
 0x15b   : > { %3437 = vst [vmem:[#allocation22_spill] sm:$0xff] %v2844_v40  ;;  %1129 = vmatpush.msrb.mxu2 %v2820_v52  ;;  %1232 = vmatpush.msrb.mxu3 %v1231_v25  ;;  %v3387_v13 = vand.u32 4294901760, %v2841_v48  ;;  %v498_v31 = vmul.f32 %v2649_v47, %v476_v49  ;;  %v461_v53 = vmul.f32 0.5, %v460_v18  ;;  %v2869_v57 = vsub.f32 %v553_v61, %v2846_v38 }
 0x15c   : > { %3438 = vst [vmem:[#allocation23_spill] sm:$0xff] %v2862_v0  ;;  %762 = vmatmul.f32.gmra.mxu1 %v2793_v34  ;;  %605 = vmatmul.f32.gmra.mxu0 %v604_v33  ;;  %v1237_v4 = vand.u32 4294901760, %v1236_v30  ;;  %v1243_v8 = vand.u32 4294901760, %v1242_v9  ;;  %v611_v19 = vsub.f32 %v609_v39, %v610_v3  ;;  %v617_v28 = vsub.f32 %v518_v17, %v2844_v40 }
 0x15d   : > { %1131 = vmatpush.msrb.mxu2 %v2846_v38  ;;  %v1248_v12 = vsub.f32 %v2841_v48, %v3387_v13  ;;  %v2875_v49 = vand.u32 4294901760, %v552_v5  ;;  %1355 = vmatpush.msra.mxu0 %v2814_v1  ;;  %v520_v18 = vadd.f32 %v2660_v36, %v498_v31  ;;  %v3389_v33 = vand.u32 4294901760, %v2869_v57 }
 0x15e   : > { %846 = vmatmul.f32.gmra.mxu2 %v609_v39  ;;  %1238 = vmatpush.msrb.mxu3 %v1237_v4  ;;  %v2880_v25 = vand.u32 4294901760, %v551_v37  ;;  %v2882_v61 = vand.u32 4294901760, %v550_v50  ;;  %v549_v39 = vld [vmem:[#allocation8 + $0xa8] sm:$0xff]  ;;  %v500_v17 = vmul.f32 %v2649_v47, %v478_v21  ;;  %vm465_vm6 = vweird.f32 %v2752_v44 }
 0x15f   : > { %1442 = vmatpush.msra.mxu1 %v2801_v2  ;;  %v1249_v30 = vand.u32 4294901760, %v1248_v12  ;;  %1133 = vmatpush.msrb.mxu2 %v2875_v49  ;;  %v2889_v4 = vsub.f32 %v552_v5, %v2875_v49  ;;  %v462_v9 = vsub.f32 1.5, %v461_v53  ;;  %v1254_v31 = vsub.f32 %v2869_v57, %v3389_v33  ;;  %vm2934_vm7 = vmor %vm464_vm5, %vm465_vm6 }
 0x160   : > { %922 = vmatmul.f32.gmra.mxu3 %v610_v3  ;;  %v2895_v13 = vsub.f32 %v551_v37, %v2880_v25  ;;  %v2898_v21 = vsub.f32 %v550_v50, %v2882_v61  ;;  %1358 = vmatpush.msra.mxu0 %v2818_v22  ;;  %v612_v3 = vand.u32 4294901760, %v611_v19  ;;  %v618_v12 = vand.u32 4294901760, %v617_v28 }
 0x161   : > { %1244 = vmatpush.msrb.mxu3 %v1243_v8  ;;  %v3394_v26 = vand.u32 4294901760, %v2889_v4  ;;  %1135 = vmatpush.msrb.mxu2 %v2880_v25  ;;  %v2903_v53 = vand.u32 4294901760, %v549_v39  ;;  %v548_v8 = vld [vmem:[#allocation8 + $0xa0] sm:$0xff]  ;;  %v2906_v5 = vand.u32 4294901760, %v520_v18  ;;  %v1255_v37 = vand.u32 4294901760, %v1254_v31 }
 0x162   : > { %1444 = vmatpush.msra.mxu1 %v2820_v52  ;;  %v3395_v50 = vand.u32 4294901760, %v2895_v13  ;;  %1361 = vmatpush.msra.mxu0 %v2841_v48  ;;  %v480_v19 = vmul.f32 %v2862_v0, %v2381_v10  ;;  %v463_v31 = vmul.f32 %v2752_v44, %v462_v9  ;;  %v3440_v10 = vand.u32 4294901760, %v2898_v21 }
 0x163   : > { %1250 = vmatpush.msrb.mxu3 %v1249_v30  ;;  %3439 = vst [vmem:[#allocation24_spill] sm:$0xff] %v2906_v5  ;;  %v1260_v15 = vsub.f32 %v2889_v4, %v3394_v26  ;;  %1137 = vmatpush.msrb.mxu2 %v2882_v61  ;;  %v2919_v30 = vsub.f32 %v549_v39, %v2903_v53  ;;  %v2928_v0 = vand.u32 4294901760, %v548_v8  ;;  %v547_v26 = vld [vmem:[#allocation8 + $0x98] sm:$0xff]  ;;  %v2968_v7 = vand.u32 4294901760, %v545_v20 }
 0x164   : > { %766 = vmatmul.f32.gmra.mxu1 %v2844_v40  ;;  %613 = vmatmul.f32.gmra.mxu0 %v612_v3  ;;  %v1266_v33 = vsub.f32 %v2895_v13, %v3395_v50  ;;  %v1272_v40 = vsub.f32 %v2898_v21, %v3440_v10  ;;  %v619_v9 = vsub.f32 %v617_v28, %v618_v12 }
 0x165   : > { %1256 = vmatpush.msrb.mxu3 %v1255_v37  ;;  %v1261_v3 = vand.u32 4294901760, %v1260_v15  ;;  %v522_v37 = vadd.f32 %v2660_v36, %v500_v17  ;;  %v3400_v50 = vand.u32 4294901760, %v2919_v30  ;;  %1364 = vmatpush.msra.mxu0 %v2869_v57  ;;  %v625_v10 = vsub.f32 %v520_v18, %v2906_v5 }
 0x166   : > { %851 = vmatmul.f32.gmra.mxu2 %v617_v28  ;;  %v1267_v34 = vand.u32 4294901760, %v1266_v33  ;;  %v2944_v46 = vsub.f32 %v548_v8, %v2928_v0  ;;  %1446 = vmatpush.msra.mxu1 %v2846_v38  ;;  %v502_v28 = vmul.f32 %v2649_v47, %v480_v19  ;;  %v2951_v17 = vand.u32 4294901760, %v547_v26 }
 0x167   : > { %1139 = vmatpush.msrb.mxu2 %v2903_v53  ;;  %v1278_v15 = vsub.f32 %v2919_v30, %v3400_v50  ;;  %1367 = vmatpush.msra.mxu0 %v2889_v4  ;;  %v2957_v18 = vsel %vm2934_vm7, %v2752_v44, %v463_v31  ;;  %v1273_v33 = vand.u32 4294901760, %v1272_v40  ;;  %v2961_v8 = vand.u32 4294901760, %v546_v11 }
 0x168   : > { %928 = vmatmul.f32.gmra.mxu3 %v618_v12  ;;  %v3404_v12 = vand.u32 4294901760, %v2944_v46  ;;  %v620_v19 = vand.u32 4294901760, %v619_v9  ;;  %v2963_v50 = vand.u32 4294901760, %v522_v37  ;;  %v2966_v58 = vsub.f32 %v547_v26, %v2951_v17  ;;  %1448 = vmatpush.msra.mxu1 %v2875_v49 }
 0x169   : > { %1262 = vmatpush.msrb.mxu3 %v1261_v3  ;;  %1141 = vmatpush.msrb.mxu2 %v2928_v0  ;;  %v626_v44 = vand.u32 4294901760, %v625_v10  ;;  %v1279_v40 = vand.u32 4294901760, %v1278_v15  ;;  %v2977_v39 = vsub.f32 %v546_v11, %v2961_v8  ;;  %v2984_v3 = vsub.f32 %v545_v20, %v2968_v7  ;;  %v544_v15 = vld [vmem:[#allocation8 + $0x80] sm:$0xff] }
 0x16a   : > { %1370 = vmatpush.msra.mxu0 %v2895_v13  ;;  %v1284_v31 = vsub.f32 %v2944_v46, %v3404_v12  ;;  %v3408_v26 = vand.u32 4294901760, %v2966_v58  ;;  %v482_v12 = vmul.f32 %v2957_v18, %v2387_v14  ;;  %v633_v11 = vsub.f32 %v522_v37, %v2963_v50  ;;  %1450 = vmatpush.msra.mxu1 %v2880_v25 }
 0x16b   : > { %1268 = vmatpush.msrb.mxu3 %v1267_v34  ;;  %1143 = vmatpush.msrb.mxu2 %v2951_v17  ;;  %v3409_v34 = vand.u32 4294901760, %v2977_v39  ;;  %v2992_v59 = vand.u32 4294901760, %v544_v15  ;;  %v1301_v20 = vand.u32 4294901760, %v2984_v3  ;;  %v3002_v37 = vperm.slane %v2621_v43, 1 }
 0x16c   : > { %770 = vmatmul.f32.gmra.mxu1 %v2906_v5  ;;  %1373 = vmatpush.msra.mxu0 %v2898_v21  ;;  %v1285_v9 = vand.u32 4294901760, %v1284_v31  ;;  %v1290_v5 = vsub.f32 %v2966_v58, %v3408_v26  ;;  %v469_v31 = vmul.f32 %v2646_v29, %v2324_v32  ;;  %v504_v43 = vmul.f32 %v2649_v47, %v482_v12 }
 0x16d   : > { %621 = vmatmul.f32.gmra.mxu0 %v620_v19  ;;  %1274 = vmatpush.msrb.mxu3 %v1273_v33  ;;  %v627_v33 = vsub.f32 %v625_v10, %v626_v44  ;;  %v524_v19 = vadd.f32 %v2660_v36, %v502_v28  ;;  %v1296_v14 = vsub.f32 %v2977_v39, %v3409_v34  ;;  %v634_v29 = vand.u32 4294901760, %v633_v11 }
 0x16e   : > { %856 = vmatmul.f32.gmra.mxu2 %v625_v10  ;;  %v1291_v26 = vand.u32 4294901760, %v1290_v5  ;;  %v3007_v10 = vsub.f32 %v544_v15, %v2992_v59  ;;  %1452 = vmatpush.msra.mxu1 %v2882_v61  ;;  %v3024_v47 = vperm.slane %v2642_v6, 1  ;;  %v3443_v15 = vand.u32 4294901760, %v2728_v60 }
 0x16f   : > { %1280 = vmatpush.msrb.mxu3 %v1279_v40  ;;  %1145 = vmatpush.msrb.mxu2 %v2961_v8  ;;  %v1297_v28 = vand.u32 4294901760, %v1296_v14  ;;  %v1302_v40 = vsub.f32 %v2984_v3, %v1301_v20  ;;  %v628_v32 = vand.u32 4294901760, %v627_v33  ;;  %v3018_v5 = vand.u32 4294901760, %v524_v19 }
 0x170   : > { %934 = vmatmul.f32.gmra.mxu3 %v626_v44  ;;  %v1307_v34 = vand.u32 4294901760, %v3007_v10  ;;  %1376 = vmatpush.msra.mxu0 %v2919_v30  ;;  %v635_v33 = vsub.f32 %v633_v11, %v634_v29  ;;  %v3444_v6 = vand.u32 4294901760, %v2731_v62 }
 0x171   : > { %1286 = vmatpush.msrb.mxu3 %v1285_v9  ;;  %1147 = vmatpush.msrb.mxu2 %v2968_v7  ;;  %v1303_v44 = vand.u32 4294901760, %v1302_v40  ;;  %v491_v9 = vmul.f32 %v3002_v37, %v469_v31  ;;  %v641_v14 = vsub.f32 %v524_v19, %v3018_v5  ;;  %v526_v31 = vadd.f32 %v2660_v36, %v504_v43 }
 0x172   : > { %1454 = vmatpush.msra.mxu1 %v2903_v53  ;;  %v1308_v12 = vsub.f32 %v3007_v10, %v1307_v34  ;;  %1379 = vmatpush.msra.mxu0 %v2944_v46  ;;  %v471_v40 = vmul.f32 %v2709_v16, %v2358_v56  ;;  %v636_v36 = vand.u32 4294901760, %v635_v33  ;;  %v3446_v19 = vand.u32 4294901760, %v2814_v1 }
 0x173   : > { %1292 = vmatpush.msrb.mxu3 %v1291_v26  ;;  %1149 = vmatpush.msrb.mxu2 %v2992_v59  ;;  %v513_v60 = vadd.f32 %v3024_v47, %v491_v9  ;;  %v3044_v62 = vand.u32 4294901760, %v526_v31  ;;  %v3448_v43 = vand.u32 4294901760, %v2841_v48 }
 0x174   : > { %774 = vmatmul.f32.gmra.mxu1 %v2963_v50  ;;  %v1309_v26 = vand.u32 4294901760, %v1308_v12  ;;  %1382 = vmatpush.msra.mxu0 %v2966_v58  ;;  %v493_v16 = vmul.f32 %v3002_v37, %v471_v40 }
 0x175   : > { %1517 = vmatpush.msra.mxu2 %v3443_v15  ;;  %629 = vmatmul.f32.gmra.mxu0 %v628_v32  ;;  %v3050_v56 = vand.u32 4294901760, %v513_v60  ;;  %v649_v1 = vsub.f32 %v526_v31, %v3044_v62  ;;  %v473_v32 = vmul.f32 %v2696_v45, %v2333_v35  ;;  %v3450_v35 = vand.u32 4294901760, %v2889_v4 }
 0x176   : > { %1298 = vmatpush.msrb.mxu3 %v1297_v28  ;;  %861 = vmatmul.f32.gmra.mxu2 %v633_v11  ;;  %v3445_v28 = vand.u32 4294901760, %v2797_v55  ;;  %v642_v11 = vand.u32 4294901760, %v641_v14  ;;  %v475_v4 = vmul.f32 %v2739_v24, %v2350_v51  ;;  %v3453_v51 = vand.u32 4294901760, %v2919_v30 }
 0x177   : > { %1521 = vmatpush.msra.mxu2 %v3444_v6  ;;  %1456 = vmatpush.msra.mxu1 %v2928_v0 }
 0x178   : > { %1304 = vmatpush.msrb.mxu3 %v1303_v44  ;;  %v643_v55 = vsub.f32 %v641_v14, %v642_v11  ;;  %1385 = vmatpush.msra.mxu0 %v2977_v39  ;;  %v497_v33 = vmul.f32 %v3002_v37, %v475_v4 }
 0x179   : > { %940 = vmatmul.f32.gmra.mxu3 %v634_v29  ;;  %1525 = vmatpush.msra.mxu2 %v3445_v28  ;;  %v650_v29 = vand.u32 4294901760, %v649_v1 }
 0x17a   : > { %1310 = vmatpush.msrb.mxu3 %v1309_v26  ;;  %1458 = vmatpush.msra.mxu1 %v2951_v17  ;;  %v644_v48 = vand.u32 4294901760, %v643_v55 }
 0x17b   : > { %1529 = vmatpush.msra.mxu2 %v3446_v19  ;;  %1388 = vmatpush.msra.mxu0 %v2984_v3  ;;  %v3463_v19 = vld [vmem:[#allocation23_spill] sm:$0xff] }
 0x17c   : > { %1612 = vmatpush.msra.mxu3 %v2667_v42  ;;  %778 = vmatmul.f32.gmra.mxu1 %v3018_v5  ;;  %v3447_v42 = vand.u32 4294901760, %v2818_v22  ;;  %v515_v22 = vadd.f32 %v3024_v47, %v493_v16 }
 0x17d   : > { %637 = vmatmul.f32.gmra.mxu0 %v636_v36  ;;  %1460 = vmatpush.msra.mxu1 %v2961_v8 }
 0x17e   : > { %1614 = vmatpush.msra.mxu3 %v2683_v63  ;;  %1533 = vmatpush.msra.mxu2 %v3447_v42  ;;  %v3064_v63 = vsub.f32 %v513_v60, %v3050_v56  ;;  %v3078_v44 = vand.u32 4294901760, %v515_v22  ;;  %v3464_v42 = vld [vmem:[#allocation22_spill] sm:$0xff] }
 0x17f   : > { %866 = vmatmul.f32.gmra.mxu2 %v641_v14  ;;  %1462 = vmatpush.msra.mxu1 %v2968_v7 }
 0x180   : > { %1616 = vmatpush.msra.mxu3 %v2704_v23  ;;  %1537 = vmatpush.msra.mxu2 %v3448_v43  ;;  %v3449_v23 = vand.u32 4294901760, %v2869_v57  ;;  %v1152_v45 = vand.u32 4294901760, %v3064_v63  ;;  %v3451_v57 = vand.u32 4294901760, %v2895_v13  ;;  %v3093_v12 = vsub.f32 %v515_v22, %v3078_v44  ;;  %v3465_v22 = vld [vmem:[#allocation17_spill] sm:$0xff] }
 0x181   : > { %946 = vmatmul.f32.gmra.mxu3 %v642_v11  ;;  %1391 = vmatpush.msra.mxu0 %v3007_v10  ;;  %v3462_v11 = vld [vmem:[#allocation16_spill] sm:$0xff] }
 0x182   : > { %1618 = vmatpush.msra.mxu3 %v2799_v41  ;;  %1541 = vmatpush.msra.mxu2 %v3449_v23  ;;  %v495_v41 = vmul.f32 %v3002_v37, %v473_v32  ;;  %v1153_v9 = vsub.f32 %v3064_v63, %v1152_v45  ;;  %v1160_v15 = vand.u32 4294901760, %v3093_v12  ;;  %v481_v16 = vmul.f32 %v3463_v19, %v3462_v11 }
 0x183   : > { %1464 = vmatpush.msra.mxu1 %v2992_v59  ;;  %v483_v23 = vmul.f32 %v2957_v18, %v3465_v22 }
 0x184   : > { %1620 = vmatpush.msra.mxu3 %v2801_v2  ;;  %1545 = vmatpush.msra.mxu2 %v3450_v35  ;;  %v651_v2 = vsub.f32 %v649_v1, %v650_v29  ;;  %v1154_v24 = vand.u32 4294901760, %v1153_v9  ;;  %v1161_v30 = vsub.f32 %v3093_v12, %v1160_v15  ;;  %v503_v32 = vmul.f32 %v3002_v37, %v481_v16 }
 0x185   : > { %782 = vmatmul.f32.gmra.mxu1 %v3044_v62  ;;  %645 = vmatmul.f32.gmra.mxu0 %v644_v48  ;;  %v505_v18 = vmul.f32 %v3002_v37, %v483_v23 }
 0x186   : > { %1622 = vmatpush.msra.mxu3 %v2820_v52  ;;  %1549 = vmatpush.msra.mxu2 %v3451_v57  ;;  %v517_v52 = vadd.f32 %v3024_v47, %v495_v41  ;;  %v652_v13 = vand.u32 4294901760, %v651_v2  ;;  %v1162_v31 = vand.u32 4294901760, %v1161_v30  ;;  %v525_v35 = vadd.f32 %v3024_v47, %v503_v32  ;;  %v3466_v41 = vld [vmem:[#allocation24_spill] sm:$0xff] }
 0x187   : > { %871 = vmatmul.f32.gmra.mxu2 %v649_v1 }
 0x188   : > { %1624 = vmatpush.msra.mxu3 %v2846_v38  ;;  %v3452_v38 = vand.u32 4294901760, %v2898_v21  ;;  %v3104_v26 = vand.u32 4294901760, %v517_v52  ;;  %v3184_v4 = vand.u32 4294901760, %v525_v35 }
 0x189   : > { %952 = vmatmul.f32.gmra.mxu3 %v650_v29 }
 0x18a   : > { %1626 = vmatpush.msra.mxu3 %v2875_v49  ;;  %1553 = vmatpush.msra.mxu2 %v3452_v38  ;;  %v3454_v49 = vand.u32 4294901760, %v2944_v46  ;;  %v3118_v14 = vsub.f32 %v517_v52, %v3104_v26  ;;  %v3458_v46 = vld [vmem:[#allocation18_spill] sm:$0xff]  ;;  %v3193_v52 = vsub.f32 %v525_v35, %v3184_v4  ;;  %v527_v38 = vadd.f32 %v3024_v47, %v505_v18 }
 0x18c   : > { %1628 = vmatpush.msra.mxu3 %v2880_v25  ;;  %1557 = vmatpush.msra.mxu2 %v3453_v51  ;;  %v3455_v25 = vld [vmem:[#allocation19_spill] sm:$0xff]  ;;  %v1168_v6 = vand.u32 4294901760, %v3118_v14  ;;  %v1200_v51 = vand.u32 4294901760, %v3193_v52 }
 0x18d   : > { %1086 = vmatmul.f32.vlgmr.msrb.gmra.mxu1 %v2724_v27  ;;  %653 = vmatmul.f32.gmra.mxu0 %v652_v13  ;;  %v477_v21 = vmul.f32 %v3455_v25, %v2354_v54  ;;  %v3457_v54 = vand.u32 4294901760, %v2977_v39 }
 0x18e   : > { %1630 = vmatpush.msra.mxu3 %v2882_v61  ;;  %1561 = vmatpush.msra.mxu2 %v3454_v49  ;;  %v519_v61 = vadd.f32 %v3024_v47, %v497_v33  ;;  %v1169_v39 = vsub.f32 %v3118_v14, %v1168_v6 }
 0x18f   : > { %1155 = vmatmul.f32.vlgmr.msrb.gmra.mxu2 %v1154_v24  ;;  %v499_v60 = vmul.f32 %v3002_v37, %v477_v21  ;;  %v1201_v24 = vsub.f32 %v3193_v52, %v1200_v51 }
 0x190   : > { %1632 = vmatpush.msra.mxu3 %v2903_v53  ;;  %v3456_v53 = vand.u32 4294901760, %v2966_v58  ;;  %v3129_v40 = vand.u32 4294901760, %v519_v61  ;;  %v3459_v58 = vld [vmem:[#allocation15_spill] sm:$0xff] }
 0x191   : > { %1312 = vmatmul.f32.vlgmr.msrb.gmra.mxu3 %v3050_v56 }
 0x192   : > { %1634 = vmatpush.msra.mxu3 %v2928_v0  ;;  %1565 = vmatpush.msra.mxu2 %v3456_v53  ;;  %v3460_v0 = vld [vmem:[#allocation21_spill] sm:$0xff]  ;;  %v3144_v28 = vsub.f32 %v519_v61, %v3129_v40 }
 0x194   : > { %1636 = vmatpush.msra.mxu3 %v2951_v17  ;;  %1569 = vmatpush.msra.mxu2 %v3457_v54  ;;  %v479_v17 = vmul.f32 %v3460_v0, %v3459_v58  ;;  %v1176_v3 = vand.u32 4294901760, %v3144_v28 }
 0x195   : > { %1090 = vmatmul.f32.gmra.mxu1 %v3458_v46  ;;  %1021 = vmatmul.f32.vlgmr.msrb.gmra.mxu0 %v2724_v27  ;;  %v521_v27 = vadd.f32 %v3024_v47, %v499_v60 }
 0x196   : > { %1638 = vmatpush.msra.mxu3 %v2961_v8  ;;  %1573 = vmatpush.msra.mxu2 %v1301_v20  ;;  %v1170_v8 = vand.u32 4294901760, %v1169_v39  ;;  %v501_v36 = vmul.f32 %v3002_v37, %v479_v17  ;;  %v3198_v37 = vand.u32 4294901760, %v527_v38 }
 0x197   : > { %1163 = vmatmul.f32.gmra.mxu2 %v1162_v31  ;;  %v3152_v20 = vand.u32 4294901760, %v521_v27 }
 0x198   : > { %1640 = vmatpush.msra.mxu3 %v2968_v7  ;;  %1577 = vmatpush.msra.mxu2 %v1307_v34  ;;  %v3461_v7 = vld [vmem:[#allocation20_spill] sm:$0xff]  ;;  %v523_v10 = vadd.f32 %v3024_v47, %v501_v36  ;;  %v3206_v33 = vsub.f32 %v527_v38, %v3198_v37  ;;  %v1202_v47 = vand.u32 4294901760, %v1201_v24 }
 0x199   : > { %1316 = vmatmul.f32.gmra.mxu3 %v3078_v44  ;;  %v3163_v34 = vsub.f32 %v521_v27, %v3152_v20 }
 0x19a   : > { %1642 = vmatpush.msra.mxu3 %v2992_v59  ;;  %v1177_v59 = vsub.f32 %v3144_v28, %v1176_v3  ;;  %v3168_v43 = vand.u32 4294901760, %v523_v10  ;;  %v1208_v49 = vand.u32 4294901760, %v3206_v33 }
 0x19b   : > { %v1184_v1 = vand.u32 4294901760, %v3163_v34 }
 0x19c   : > { %v1178_v55 = vand.u32 4294901760, %v1177_v59  ;;  %v3179_v29 = vsub.f32 %v523_v10, %v3168_v43  ;;  %v1209_v25 = vsub.f32 %v3206_v33, %v1208_v49 }
 0x19d   : > { %1094 = vmatmul.f32.gmra.mxu1 %v3461_v7  ;;  %1025 = vmatmul.f32.gmra.mxu0 %v3458_v46  ;;  %v1185_v48 = vsub.f32 %v3163_v34, %v1184_v1 }
 0x19e   : > { %v1192_v57 = vand.u32 4294901760, %v3179_v29  ;;  %v1210_v21 = vand.u32 4294901760, %v1209_v25 }
 0x19f   : > { %1171 = vmatmul.f32.gmra.mxu2 %v1170_v8  ;;  %v1186_v2 = vand.u32 4294901760, %v1185_v48 }
 0x1a0   : > { %v1193_v9 = vsub.f32 %v3179_v29, %v1192_v57 }
 0x1a1   : > { %1320 = vmatmul.f32.gmra.mxu3 %v3104_v26 }
 0x1a2   : > { %v1194_v13 = vand.u32 4294901760, %v1193_v9 }
 0x1a5   : > { %1098 = vmatmul.f32.gmra.mxu1 %v3464_v42  ;;  %1029 = vmatmul.f32.gmra.mxu0 %v3461_v7 }
 0x1a7   : > { %1179 = vmatmul.f32.gmra.mxu2 %v1178_v55 }
 0x1a9   : > { %1324 = vmatmul.f32.gmra.mxu3 %v3129_v40 }
 0x1ad   : > { %1102 = vmatmul.f32.gmra.mxu1 %v3466_v41  ;;  %1033 = vmatmul.f32.gmra.mxu0 %v3464_v42 }
 0x1af   : > { %1187 = vmatmul.f32.gmra.mxu2 %v1186_v2 }
 0x1b1   : > { %1328 = vmatmul.f32.gmra.mxu3 %v3152_v20 }
 0x1b5   : > { %1106 = vmatmul.f32.gmra.mxu1 %v2963_v50  ;;  %1037 = vmatmul.f32.gmra.mxu0 %v3466_v41 }
 0x1b7   : > { %1195 = vmatmul.f32.gmra.mxu2 %v1194_v13 }
 0x1b9   : > { %1332 = vmatmul.f32.gmra.mxu3 %v3168_v43 }
 0x1bd   : > { %1110 = vmatmul.f32.gmra.mxu1 %v3018_v5  ;;  %1041 = vmatmul.f32.gmra.mxu0 %v2963_v50 }
 0x1bf   : > { %1203 = vmatmul.f32.gmra.mxu2 %v1202_v47 }
 0x1c1   : > { %1336 = vmatmul.f32.gmra.mxu3 %v3184_v4 }
 0x1c5   : > { %1114 = vmatmul.f32.gmra.mxu1 %v3044_v62  ;;  %1045 = vmatmul.f32.gmra.mxu0 %v3018_v5 }
 0x1c7   : > { %1211 = vmatmul.f32.gmra.mxu2 %v1210_v21 }
 0x1c8   : > { %v755_v30 = vpop.f32.mrf.mxu1 }
 0x1c9   : > { %1340 = vmatmul.f32.gmra.mxu3 %v3198_v37 }
 0x1cd   : > { %1468 = vmatmul.f32.vlgmr.msra.gmra.mxu1 %v1152_v45  ;;  %1049 = vmatmul.f32.gmra.mxu0 %v3044_v62 }
 0x1cf   : > { %1579 = vmatmul.f32.vlgmr.msra.gmra.mxu2 %v3050_v56 }
 0x1d0   : > { %v837_v61 = vpop.f32.mrf.mxu2  ;;  %v598_v53 = vpop.f32.mrf.mxu0 }
 0x1d1   : > { %1644 = vmatmul.f32.vlgmr.msra.gmra.mxu3 %v3050_v56  ;;  %v759_v50 = vpop.f32.mrf.mxu1  ;;  %v756_v54 = vadd.f32 %v755_v30, %v598_v53 }
 0x1d2   : > { %v911_v46 = vpop.f32.mrf.mxu3 }
 0x1d3   : > { %v838_v5 = vadd.f32 %v837_v61, %v756_v54 }
 0x1d5   : > { %1474 = vmatmul.f32.gmra.mxu1 %v1160_v15  ;;  %1394 = vmatmul.f32.vlgmr.msra.gmra.mxu0 %v3064_v63  ;;  %v3227_v45 = vadd.f32 %v911_v46, %v838_v5 }
 0x1d7   : > { %1583 = vmatmul.f32.gmra.mxu2 %v3078_v44 }
 0x1d9   : > { %1648 = vmatmul.f32.gmra.mxu3 %v3078_v44  ;;  %v763_v62 = vpop.f32.mrf.mxu1  ;;  %v842_v31 = vpop.f32.mrf.mxu2 }
 0x1da   : > { %v606_v56 = vpop.f32.mrf.mxu0 }
 0x1db   : > { %v760_v60 = vadd.f32 %v759_v50, %v606_v56  ;;  %v917_v58 = vpop.f32.mrf.mxu3 }
 0x1dd   : > { %1480 = vmatmul.f32.gmra.mxu1 %v1168_v6  ;;  %v843_v0 = vadd.f32 %v842_v31, %v760_v60  ;;  %1399 = vmatmul.f32.gmra.mxu0 %v3093_v12 }
 0x1df   : > { %1587 = vmatmul.f32.gmra.mxu2 %v3104_v26  ;;  %v3234_v63 = vadd.f32 %v917_v58, %v843_v0 }
 0x1e1   : > { %1652 = vmatmul.f32.gmra.mxu3 %v3104_v26  ;;  %v767_v15 = vpop.f32.mrf.mxu1  ;;  %v847_v17 = vpop.f32.mrf.mxu2 }
 0x1e2   : > { %v614_v44 = vpop.f32.mrf.mxu0 }
 0x1e3   : > { %v764_v39 = vadd.f32 %v763_v62, %v614_v44  ;;  %v923_v27 = vpop.f32.mrf.mxu3 }
 0x1e5   : > { %1486 = vmatmul.f32.gmra.mxu1 %v1176_v3  ;;  %v848_v7 = vadd.f32 %v847_v17, %v764_v39  ;;  %1404 = vmatmul.f32.gmra.mxu0 %v3118_v14 }
 0x1e7   : > { %1591 = vmatmul.f32.gmra.mxu2 %v3129_v40  ;;  %v3241_v12 = vadd.f32 %v923_v27, %v848_v7 }
 0x1e9   : > { %1656 = vmatmul.f32.gmra.mxu3 %v3129_v40  ;;  %v771_v6 = vpop.f32.mrf.mxu1  ;;  %v852_v8 = vpop.f32.mrf.mxu2 }
 0x1ea   : > { %v622_v26 = vpop.f32.mrf.mxu0 }
 0x1eb   : > { %v768_v36 = vadd.f32 %v767_v15, %v622_v26  ;;  %v929_v11 = vpop.f32.mrf.mxu3 }
 0x1ed   : > { %1492 = vmatmul.f32.gmra.mxu1 %v1184_v1  ;;  %v853_v19 = vadd.f32 %v852_v8, %v768_v36  ;;  %1409 = vmatmul.f32.gmra.mxu0 %v3144_v28 }
 0x1ef   : > { %1595 = vmatmul.f32.gmra.mxu2 %v3152_v20  ;;  %v3248_v14 = vadd.f32 %v929_v11, %v853_v19 }
 0x1f1   : > { %1660 = vmatmul.f32.gmra.mxu3 %v3152_v20  ;;  %v775_v3 = vpop.f32.mrf.mxu1  ;;  %v857_v16 = vpop.f32.mrf.mxu2 }
 0x1f2   : > { %v630_v40 = vpop.f32.mrf.mxu0 }
 0x1f3   : > { %v772_v59 = vadd.f32 %v771_v6, %v630_v40  ;;  %v935_v10 = vpop.f32.mrf.mxu3 }
 0x1f5   : > { %1498 = vmatmul.f32.gmra.mxu1 %v1192_v57  ;;  %v858_v42 = vadd.f32 %v857_v16, %v772_v59  ;;  %1414 = vmatmul.f32.gmra.mxu0 %v3163_v34 }
 0x1f7   : > { %1599 = vmatmul.f32.gmra.mxu2 %v3168_v43  ;;  %v3255_v28 = vadd.f32 %v935_v10, %v858_v42 }
 0x1f9   : > { %1664 = vmatmul.f32.gmra.mxu3 %v3168_v43  ;;  %v779_v55 = vpop.f32.mrf.mxu1  ;;  %v862_v1 = vpop.f32.mrf.mxu2 }
 0x1fa   : > { %v638_v20 = vpop.f32.mrf.mxu0 }
 0x1fb   : > { %v776_v32 = vadd.f32 %v775_v3, %v638_v20 }
 0x1fc   : > { %v941_v22 = vpop.f32.mrf.mxu3 }
 0x1fd   : > { %1504 = vmatmul.f32.gmra.mxu1 %v1200_v51  ;;  %v863_v23 = vadd.f32 %v862_v1, %v776_v32  ;;  %1419 = vmatmul.f32.gmra.mxu0 %v3179_v29 }
 0x1ff   : > { %1603 = vmatmul.f32.gmra.mxu2 %v3184_v4  ;;  %v3262_v34 = vadd.f32 %v941_v22, %v863_v23 }
 0x201   : > { %1668 = vmatmul.f32.gmra.mxu3 %v3184_v4 }
 0x202   : > { %v783_v48 = vpop.f32.mrf.mxu1  ;;  %v867_v35 = vpop.f32.mrf.mxu2 }
 0x203   : > { %v646_v43 = vpop.f32.mrf.mxu0 }
 0x204   : > { %v780_v41 = vadd.f32 %v779_v55, %v646_v43  ;;  %v947_v2 = vpop.f32.mrf.mxu3 }
 0x205   : > { %1510 = vmatmul.f32.gmra.mxu1 %v1208_v49  ;;  %1424 = vmatmul.f32.gmra.mxu0 %v3193_v52 }
 0x206   : > { %v868_v57 = vadd.f32 %v867_v35, %v780_v41 }
 0x207   : > { %1607 = vmatmul.f32.gmra.mxu2 %v3198_v37 }
 0x208   : > { %v3269_v29 = vadd.f32 %v947_v2, %v868_v57 }
 0x209   : > { %1672 = vmatmul.f32.gmra.mxu3 %v3198_v37 }
 0x20a   : > { %v872_v18 = vpop.f32.mrf.mxu2  ;;  %v1087_v9 = vpop.f32.mrf.mxu1 }
 0x20b   : > { %v654_v4 = vpop.f32.mrf.mxu0 }
 0x20c   : > { %v784_v38 = vadd.f32 %v783_v48, %v654_v4  ;;  %v953_v13 = vpop.f32.mrf.mxu3 }
 0x20d   : > { %1429 = vmatmul.f32.gmra.mxu0 %v3206_v33 }
 0x20e   : > { %v873_v51 = vadd.f32 %v872_v18, %v784_v38 }
 0x210   : > { %v3273_v24 = vadd.f32 %v953_v13, %v873_v51 }
 0x212   : > { %v1091_v47 = vpop.f32.mrf.mxu1  ;;  %v1156_v49 = vpop.f32.mrf.mxu2 }
 0x213   : > { %v1022_v25 = vpop.f32.mrf.mxu0 }
 0x214   : > { %v1313_v52 = vpop.f32.mrf.mxu3  ;;  %v1023_v26 = vadd.f32 %v1022_v25, %v3227_v45 }
 0x216   : > { %v1088_v36 = vadd.f32 %v1087_v9, %v1023_v26 }
 0x218   : > { %v1157_v40 = vadd.f32 %v1156_v49, %v1088_v36 }
 0x21a   : > { %v1095_v21 = vpop.f32.mrf.mxu1  ;;  %v1164_v30 = vpop.f32.mrf.mxu2  ;;  %v1314_v10 = vadd.f32 %v1313_v52, %v1157_v40 }
 0x21b   : > { %v1026_v50 = vpop.f32.mrf.mxu0 }
 0x21c   : > { %v1317_v61 = vpop.f32.mrf.mxu3  ;;  %v1027_v59 = vadd.f32 %v1026_v50, %v3234_v63 }
 0x21e   : > { %v1092_v42 = vadd.f32 %v1091_v47, %v1027_v59 }
 0x220   : > { %v1165_v45 = vadd.f32 %v1164_v30, %v1092_v42 }
 0x222   : > { %v1099_v53 = vpop.f32.mrf.mxu1  ;;  %v1172_v37 = vpop.f32.mrf.mxu2  ;;  %v1318_v43 = vadd.f32 %v1317_v61, %v1165_v45 }
 0x223   : > { %v1030_v54 = vpop.f32.mrf.mxu0 }
 0x224   : > { %v1321_v46 = vpop.f32.mrf.mxu3  ;;  %v1031_v23 = vadd.f32 %v1030_v54, %v3241_v12 }
 0x226   : > { %v1096_v41 = vadd.f32 %v1095_v21, %v1031_v23 }
 0x228   : > { %v1173_v38 = vadd.f32 %v1172_v37, %v1096_v41 }
 0x22a   : > { %v3275_v5 = vpop.f32.mrf.mxu1  ;;  %v1180_v62 = vpop.f32.mrf.mxu2  ;;  %v1322_v47 = vadd.f32 %v1321_v46, %v1173_v38 }
 0x22b   : > { %v1034_v31 = vpop.f32.mrf.mxu0 }
 0x22c   : > { %v1325_v56 = vpop.f32.mrf.mxu3  ;;  %v1035_v13 = vadd.f32 %v1034_v31, %v3248_v14 }
 0x22e   : > { %v1100_v49 = vadd.f32 %v1099_v53, %v1035_v13 }
 0x230   : > { %v1181_v54 = vadd.f32 %v1180_v62, %v1100_v49 }
 0x232   : > { %v3277_v33 = vpop.f32.mrf.mxu1  ;;  %v3279_v60 = vpop.f32.mrf.mxu2  ;;  %v1326_v37 = vadd.f32 %v1325_v56, %v1181_v54 }
 0x233   : > { %v1038_v58 = vpop.f32.mrf.mxu0 }
 0x234   : > { %v3281_v0 = vpop.f32.mrf.mxu3  ;;  %v1039_v26 = vadd.f32 %v1038_v58, %v3255_v28 }
 0x236   : > { %v1104_v14 = vadd.f32 %v3275_v5, %v1039_v26 }
 0x23a   : > { %v3283_v15 = vpop.f32.mrf.mxu1  ;;  %v3285_v17 = vpop.f32.mrf.mxu2 }
 0x23b   : > { %v1042_v44 = vpop.f32.mrf.mxu0 }
 0x23c   : > { %v3287_v39 = vpop.f32.mrf.mxu3  ;;  %v1043_v42 = vadd.f32 %v1042_v44, %v3262_v34 }
 0x23e   : > { %v1108_v56 = vadd.f32 %v3277_v33, %v1043_v42 }
 0x240   : > { %v1197_v45 = vadd.f32 %v3285_v17, %v1108_v56 }
 0x242   : > { %v3289_v27 = vpop.f32.mrf.mxu1  ;;  %v3291_v7 = vpop.f32.mrf.mxu2 }
 0x243   : > { %v3293_v6 = vpop.f32.mrf.mxu0 }
 0x244   : > { %v3295_v8 = vpop.f32.mrf.mxu3 }
 0x24a   : > { %v3298_v11 = vpop.f32.mrf.mxu2  ;;  %v1469_v19 = vpop.f32.mrf.mxu1 }
 0x24b   : > { %v3300_v3 = vpop.f32.mrf.mxu0 }
 0x24c   : > { %v3302_v16 = vpop.f32.mrf.mxu3 }
 0x252   : > { %v1475_v55 = vpop.f32.mrf.mxu1  ;;  %v1580_v1 = vpop.f32.mrf.mxu2 }
 0x253   : > { %v1395_v20 = vpop.f32.mrf.mxu0 }
 0x254   : > { %v1396_v32 = vadd.f32 %v1395_v20, %v1314_v10  ;;  %v1645_v22 = vpop.f32.mrf.mxu3  ;;  %v1189_v10 = vadd.f32 %v3279_v60, %v1104_v14  ;;  %v1047_v60 = vadd.f32 %v3293_v6, %v3269_v29  ;;  %v1051_v29 = vadd.f32 %v3300_v3, %v3273_v24 }
 0x256   : > { %v1470_v48 = vadd.f32 %v1469_v19, %v1396_v32  ;;  %v1330_v28 = vadd.f32 %v3281_v0, %v1189_v10  ;;  %v1112_v0 = vadd.f32 %v3283_v15, %v1047_v60  ;;  %v1116_v15 = vadd.f32 %v3289_v27, %v1051_v29 }
 0x258   : > { %v1581_v35 = vadd.f32 %v1580_v1, %v1470_v48  ;;  %v1334_v48 = vadd.f32 %v3287_v39, %v1197_v45 }
 0x25a   : > { %v1646_v2 = vadd.f32 %v1645_v22, %v1581_v35  ;;  %v1584_v57 = vpop.f32.mrf.mxu2  ;;  %v1481_v9 = vpop.f32.mrf.mxu1 }
 0x25b   : > { %v1400_v18 = vpop.f32.mrf.mxu0 }
 0x25c   : > { %1676 = vst [vmem:[%s3307_s26] sm:$0xff] %v1646_v2  ;;  %v1401_v63 = vadd.f32 %v1400_v18, %v1318_v43  ;;  %v1649_v4 = vpop.f32.mrf.mxu3 }
 0x25e   : > { %v1476_v12 = vadd.f32 %v1475_v55, %v1401_v63 }
 0x260   : > { %v1585_v51 = vadd.f32 %v1584_v57, %v1476_v12  ;;  %v1205_v57 = vadd.f32 %v3291_v7, %v1112_v0  ;;  %v1213_v7 = vadd.f32 %v3298_v11, %v1116_v15 }
 0x262   : > { %v1650_v25 = vadd.f32 %v1649_v4, %v1585_v51  ;;  %v1588_v52 = vpop.f32.mrf.mxu2  ;;  %v1487_v61 = vpop.f32.mrf.mxu1  ;;  %v1338_v18 = vadd.f32 %v3295_v8, %v1205_v57  ;;  %v1342_v24 = vadd.f32 %v3302_v16, %v1213_v7 }
 0x263   : > { %v1405_v21 = vpop.f32.mrf.mxu0 }
 0x264   : > { %1677 = vst [vmem:[%s3307_s26 + $0x8] sm:$0xff] %v1650_v25  ;;  %v1406_v30 = vadd.f32 %v1405_v21, %v1322_v47  ;;  %v1653_v50 = vpop.f32.mrf.mxu3 }
 0x266   : > { %v1482_v36 = vadd.f32 %v1481_v9, %v1406_v30 }
 0x268   : > { %v1589_v19 = vadd.f32 %v1588_v52, %v1482_v36 }
 0x26a   : > { %v1654_v31 = vadd.f32 %v1653_v50, %v1589_v19  ;;  %v1592_v46 = vpop.f32.mrf.mxu2  ;;  %v1493_v62 = vpop.f32.mrf.mxu1 }
 0x26b   : > { %v1410_v53 = vpop.f32.mrf.mxu0 }
 0x26c   : > { %1678 = vst [vmem:[%s3307_s26 + $0x10] sm:$0xff] %v1654_v31  ;;  %v1411_v40 = vadd.f32 %v1410_v53, %v1326_v37  ;;  %v1657_v59 = vpop.f32.mrf.mxu3 }
 0x26e   : > { %v1488_v55 = vadd.f32 %v1487_v61, %v1411_v40 }
 0x270   : > { %v1593_v1 = vadd.f32 %v1592_v46, %v1488_v55 }
 0x272   : > { %v1658_v58 = vadd.f32 %v1657_v59, %v1593_v1  ;;  %v1596_v5 = vpop.f32.mrf.mxu2  ;;  %v1499_v23 = vpop.f32.mrf.mxu1 }
 0x273   : > { %v1415_v20 = vpop.f32.mrf.mxu0 }
 0x274   : > { %1679 = vst [vmem:[%s3307_s26 + $0x18] sm:$0xff] %v1658_v58  ;;  %v1416_v32 = vadd.f32 %v1415_v20, %v1330_v28  ;;  %v1661_v22 = vpop.f32.mrf.mxu3 }
 0x276   : > { %v1494_v34 = vadd.f32 %v1493_v62, %v1416_v32 }
 0x278   : > { %v1597_v44 = vadd.f32 %v1596_v5, %v1494_v34 }
 0x27a   : > { %v1662_v33 = vadd.f32 %v1661_v22, %v1597_v44  ;;  %v1600_v43 = vpop.f32.mrf.mxu2  ;;  %v1505_v9 = vpop.f32.mrf.mxu1 }
 0x27b   : > { %v1420_v35 = vpop.f32.mrf.mxu0 }
 0x27c   : > { %1680 = vst [vmem:[%s3307_s26 + $0x20] sm:$0xff] %v1662_v33  ;;  %v1421_v41 = vadd.f32 %v1420_v35, %v1334_v48  ;;  %v1665_v2 = vpop.f32.mrf.mxu3 }
 0x27e   : > { %v1500_v17 = vadd.f32 %v1499_v23, %v1421_v41 }
 0x280   : > { %v1601_v6 = vadd.f32 %v1600_v43, %v1500_v17 }
 0x282   : > { %v1666_v39 = vadd.f32 %v1665_v2, %v1601_v6  ;;  %v1604_v38 = vpop.f32.mrf.mxu2  ;;  %v1511_v47 = vpop.f32.mrf.mxu1 }
 0x283   : > { %v1425_v63 = vpop.f32.mrf.mxu0 }
 0x284   : > { %1681 = vst [vmem:[%s3307_s26 + $0x28] sm:$0xff] %v1666_v39  ;;  %v1426_v4 = vadd.f32 %v1425_v63, %v1338_v18  ;;  %v1669_v12 = vpop.f32.mrf.mxu3 }
 0x286   : > { %v1506_v13 = vadd.f32 %v1505_v9, %v1426_v4 }
 0x288   : > { %v1605_v51 = vadd.f32 %v1604_v38, %v1506_v13 }
 0x28a   : > { %v1670_v8 = vadd.f32 %v1669_v12, %v1605_v51  ;;  %v1608_v49 = vpop.f32.mrf.mxu2 }
 0x28b   : > { %v1430_v3 = vpop.f32.mrf.mxu0 }
 0x28c   : > { %1682 = vst [vmem:[%s3307_s26 + $0x30] sm:$0xff] %v1670_v8  ;;  %v1431_v27 = vadd.f32 %v1430_v3, %v1342_v24  ;;  %v1673_v52 = vpop.f32.mrf.mxu3 }
 0x28e   : > { %v1512_v11 = vadd.f32 %v1511_v47, %v1431_v27 }
 0x290   : > { %v1609_v25 = vadd.f32 %v1608_v49, %v1512_v11 }
 0x292   : > { %v1674_v16 = vadd.f32 %v1673_v52, %v1609_v25 }
 0x294   : > { %1683 = vst [vmem:[%s3307_s26 + $0x38] sm:$0xff] %v1674_v16 }
 0x295   : > { %2078 = shalt.err (!%p2075_p11)
}
 0x296   : > { %s2132_s29 = smov 128   ;;  %s2133_s25 = smov 8  }
 0x297   : > { %1848 = dma.vmem_to_hbm [thread:$0]  (%p2244_p3), %s1698_s12, 1024, %s1700_s13, %s1685_s19, %s2132_s29, %s2132_s29, %s2133_s25  }
 0x298 PF: > { %s1714_s21 = sand.u32 1, %s2113_s15   ;;  %p3467_p12 = scmp.ge.s32.totalorder %s2125_s18, 2 }
 0x299   : > { %s1715_s26 = scalar_lea.sflag [#allocation4], %s1714_s21 }
 0x29a   : > { %p1865_p13 = pnand %p3467_p12, %p2194_p6 }
 0x29c   : > { %p1866_p0 = pneg %p1865_p13 }
 0x29e   : > { %2108 = dma.done.wait (%p1866_p0), %s1715_s26, 1024  }
 0x29f   : > { %2110 = vsyncadd (%p1866_p0), %s1715_s26, 4294966272  ;;  %p19_p5 = scmp.ge.s32.totalorder %s2231_s23, 4   ;;  %s3468_s15 = smov %s2117_s16 }
 0x2a0   : > { %s3469_s16 = smov %s2121_s17  ;;  %s3470_s17 = smov %s2240_s27 }
 0x2a1   : > { %s3471_s18 = smov %s2231_s23  ;;  %21 = sbr.rel (!%p19_p5) target bundleno = 7 (0x7), region = 94 }
 0x2a6   :  { %1721 = vsyncpa [#allocation3], 1 }
 0x2a7   :  { %1723 = vsyncpa [#allocation3 + $0x1], 1 }
 0x2a8   :  { %1724 = vsyncpa [#allocation6], 1 }
 0x2a9   :  { %1725 = vsyncpa [#allocation9], 1 }
 0x2aa   :  { %1726 = vsyncpa [#allocation4], 1 }
 0x2ab   :  { %1728 = vsyncpa [#allocation4 + $0x1], 1 }

</bundles_post_ra>
